<compile_context>
chip_gen: v6e
topology: v6e:2x2x1
jax: 0.10.0
libtpu: 0.0.40
codegen_flags: <defaults>
</compile_context>

<pallas_src>
import functools

import jax
import jax.numpy as jnp
from jax.experimental import pallas as pl
from jax.experimental.pallas import tpu as pltpu

# ---- tiny BERT config (synthetic, deterministic init) ----
NUM_LAYERS = 2
NUM_HEADS = 4
HIDDEN = 32
HEAD_DIM = HIDDEN // NUM_HEADS
INTERMEDIATE = 4 * HIDDEN
NUM_LABELS = 3
PADDED_LABELS = 128          # lane-dense classifier output; real labels live in [:NUM_LABELS]
LN_EPS = 1e-12
ATTN_SCALE = 1.0 / float(HEAD_DIM) ** 0.5
MASK_NEG = -1e9              # extended attention mask additive value
MXU_DTYPE = jnp.bfloat16     # matmul operand dtype; accumulation stays f32


# ---------------------------------------------------------------------------
# Fused kernel: encoder (L layers) + pooler + classifier + relative head
# ---------------------------------------------------------------------------
def _mm(a, w):
    """MXU matmul: bf16 operands, f32 accumulation."""
    return jnp.dot(a.astype(MXU_DTYPE), w.astype(MXU_DTYPE),
                   preferred_element_type=jnp.float32)


def _ln(h, g, b):
    """LayerNorm over the hidden axis in f32."""
    mu = jnp.mean(h, axis=-1, keepdims=True)
    var = jnp.mean(jnp.square(h - mu), axis=-1, keepdims=True)
    return (h - mu) * jax.lax.rsqrt(var + LN_EPS) * g + b


def _fused_forward_kernel(
        x_ref, mask_ref,
        wqkv_ref, bqkv_ref, wo_ref, bo_ref, ln1_g_ref, ln1_b_ref,
        wi_ref, bi_ref, wo2_ref, bo2_ref, ln2_g_ref, ln2_b_ref,
        wp_ref, bp_ref, wc_ref, bc_ref,
        out_ref):
    S, H = x_ref.shape[1], x_ref.shape[2]

    x = x_ref[0].astype(jnp.float32)                         # (S, H) activations, lane-dense
    # get_extended_attention_mask: (1 - mask) * large_negative, additive over key positions.
    # get_head_mask(None, L) -> identity (no-op).
    mask_add = (1.0 - mask_ref[0]) * MASK_NEG                # (1, S)

    for l in range(NUM_LAYERS):                              # static unroll, weights VMEM-resident
        # ---- self-attention: fused QKV projection, per-head 2-D matmuls ----
        qkv = _mm(x, wqkv_ref[l]) + bqkv_ref[l]              # (S, 3H)
        wo_l = wo_ref[l]                                     # (H, H)
        attn = jnp.zeros((S, H), jnp.float32)
        for h in range(NUM_HEADS):
            lo = h * HEAD_DIM
            qh = qkv[:, lo:lo + HEAD_DIM]                    # (S, dh)
            kh = qkv[:, H + lo:H + lo + HEAD_DIM]            # (S, dh)
            vh = qkv[:, 2 * H + lo:2 * H + lo + HEAD_DIM]    # (S, dh)
            s = jax.lax.dot_general(                         # q @ k^T  -> (S, S)
                qh.astype(MXU_DTYPE), kh.astype(MXU_DTYPE),
                (((1,), (1,)), ((), ())),
                preferred_element_type=jnp.float32) * ATTN_SCALE
            s = s + mask_add                                 # broadcast over query rows
            s = s - jnp.max(s, axis=-1, keepdims=True)
            p = jnp.exp(s)
            p = p * pl.reciprocal(jnp.sum(p, axis=-1, keepdims=True), approx=True)
            ctx_h = _mm(p, vh)                               # (S, dh)
            # fold output projection: concat_h(ctx_h) @ Wo == sum_h ctx_h @ Wo[h*dh:(h+1)*dh, :]
            attn = attn + _mm(ctx_h, wo_l[lo:lo + HEAD_DIM, :])
        attn = attn + bo_ref[l]
        h1 = _ln(attn + x, ln1_g_ref[l], ln1_b_ref[l])       # post-LN with residual

        # ---- feed-forward ----
        # TODO(synk): HF BERT default is exact erf-GELU; tanh-approx GELU used for robust
        # Mosaic lowering (difference is ~1e-3 relative).
        inter = jax.nn.gelu(_mm(h1, wi_ref[l]) + bi_ref[l], approximate=True)
        ffn = _mm(inter, wo2_ref[l]) + bo2_ref[l]
        x = _ln(ffn + h1, ln2_g_ref[l], ln2_b_ref[l])

    # ---- pooler (tanh dense on [CLS]) -> dropout (identity at eval) -> classifier ----
    cls = x[0:1, :]                                          # (1, H)
    pooled = jnp.tanh(_mm(cls, wp_ref[...]) + bp_ref[...])   # (1, H)
    logits = _mm(pooled, wc_ref[...]) + bc_ref[...]          # (1, PADDED_LABELS)

    # relative head: logits - logits.mean(dim=1, keepdim=True) over the real NUM_LABELS lanes
    lane = jax.lax.broadcasted_iota(jnp.int32, logits.shape, 1)
    valid = lane < NUM_LABELS
    mean = jnp.sum(jnp.where(valid, logits, 0.0), axis=-1, keepdims=True) * (1.0 / NUM_LABELS)
    out_ref[0] = jnp.where(valid, logits - mean, 0.0).astype(out_ref.dtype)


# ---------------------------------------------------------------------------
# Parameter init (deterministic, synthetic) and forward wrapper
# ---------------------------------------------------------------------------
def init_params(key):
    def w(k, shape):
        return 0.02 * jax.random.normal(k, shape, jnp.float32)

    L, H, I = NUM_LAYERS, HIDDEN, INTERMEDIATE
    ks = jax.random.split(key, 8)
    wq, wk, wv = w(ks[0], (L, H, H)), w(ks[1], (L, H, H)), w(ks[2], (L, H, H))
    wc = w(ks[7], (H, NUM_LABELS))
    bc = jnp.zeros((NUM_LABELS,), jnp.float32)
    wc_pad = jnp.zeros((H, PADDED_LABELS), jnp.float32).at[:, :NUM_LABELS].set(wc)
    bc_pad = jnp.zeros((1, PADDED_LABELS), jnp.float32).at[0, :NUM_LABELS].set(bc)
    return dict(
        wqkv=jnp.concatenate([wq, wk, wv], axis=-1),                  # (L, H, 3H) fused QKV
        bqkv=jnp.zeros((L, 1, 3 * H), jnp.float32),
        wo=w(ks[3], (L, H, H)), bo=jnp.zeros((L, 1, H), jnp.float32),
        ln1_g=jnp.ones((L, 1, H), jnp.float32), ln1_b=jnp.zeros((L, 1, H), jnp.float32),
        wi=w(ks[4], (L, H, I)), bi=jnp.zeros((L, 1, I), jnp.float32),
        wo2=w(ks[5], (L, I, H)), bo2=jnp.zeros((L, 1, H), jnp.float32),
        ln2_g=jnp.ones((L, 1, H), jnp.float32), ln2_b=jnp.zeros((L, 1, H), jnp.float32),
        wp=w(ks[6], (H, H)), bp=jnp.zeros((1, H), jnp.float32),
        wc_pad=wc_pad, bc_pad=bc_pad,
    )


def _full_spec(shape):
    """Whole-array VMEM-resident block (same block for every grid step)."""
    return pl.BlockSpec(shape, lambda b, _nd=len(shape): (0,) * _nd)


def relative_bert_forward(embeddings, attention_mask, params):
    """embeddings: (B, S, H) float32; attention_mask: (B, S) {0,1}. Returns (B, NUM_LABELS)."""
    B, S, H = embeddings.shape
    mask3 = attention_mask.astype(jnp.float32).reshape(B, 1, S)

    weight_args = (
        params["wqkv"], params["bqkv"], params["wo"], params["bo"],
        params["ln1_g"], params["ln1_b"],
        params["wi"], params["bi"], params["wo2"], params["bo2"],
        params["ln2_g"], params["ln2_b"],
        params["wp"], params["bp"], params["wc_pad"], params["bc_pad"],
    )

    # advisory cost estimate for XLA scheduling
    per_layer_flops = (2 * S * H * 3 * H
                       + NUM_HEADS * (4 * S * S * HEAD_DIM + 2 * S * HEAD_DIM * H)
                       + 2 * S * H * INTERMEDIATE + 2 * S * INTERMEDIATE * H)
    head_flops = 2 * H * H + 2 * H * PADDED_LABELS
    flops = B * (NUM_LAYERS * per_layer_flops + head_flops)
    transc = B * (NUM_LAYERS * (NUM_HEADS * S * S + S * INTERMEDIATE) + H)
    weight_bytes = sum(int(a.size) * a.dtype.itemsize for a in weight_args)
    bytes_accessed = (int(embeddings.size) * 4 + int(mask3.size) * 4
                      + weight_bytes + B * PADDED_LABELS * 4)
    cost = pl.CostEstimate(flops=flops, transcendentals=transc,
                           bytes_accessed=bytes_accessed)

    in_specs = [
        pl.BlockSpec((1, S, H), lambda b: (b, 0, 0)),        # per-batch activations
        pl.BlockSpec((1, 1, S), lambda b: (b, 0, 0)),        # per-batch attention mask
    ] + [_full_spec(a.shape) for a in weight_args]

    out = pl.pallas_call(
        _fused_forward_kernel,
        out_shape=jax.ShapeDtypeStruct((B, 1, PADDED_LABELS), jnp.float32),
        grid=(B,),
        in_specs=in_specs,
        out_specs=pl.BlockSpec((1, 1, PADDED_LABELS), lambda b: (b, 0, 0)),
        compiler_params=pltpu.CompilerParams(dimension_semantics=("parallel",)),
        cost_estimate=cost,
    )(embeddings, mask3, *weight_args)

    return out[:, 0, :NUM_LABELS]


if __name__ == "__main__":
    key = jax.random.PRNGKey(0)
    pkey, ekey = jax.random.split(key)
    params = init_params(pkey)

    B, S = 2, 8
    embeddings = jax.random.normal(ekey, (B, S, HIDDEN), jnp.float32)
    attention_mask = jnp.ones((B, S), jnp.int32).at[1, 6:].set(0)  # second example padded

    fwd = jax.jit(relative_bert_forward)
    out = jax.block_until_ready(fwd(embeddings, attention_mask, params))
    assert out.shape == (B, NUM_LABELS)
    assert bool(jnp.all(jnp.isfinite(out)))
    # relative head sanity: per-row mean of logits is ~0
    assert bool(jnp.all(jnp.abs(jnp.mean(out, axis=1)) < 1e-4))
    print("KERNEL_OK")
</pallas_src>

<mosaic_0001>
module attributes {stable_mosaic.version = 11 : i64} {
  func.func @_fused_forward_kernel(%arg0: i32, %arg1: memref<1x8x32xf32, #tpu.memory_space<vmem>>, %arg2: memref<1x1x8xf32, #tpu.memory_space<vmem>>, %arg3: memref<2x32x96xf32, #tpu.memory_space<vmem>>, %arg4: memref<2x1x96xf32, #tpu.memory_space<vmem>>, %arg5: memref<2x32x32xf32, #tpu.memory_space<vmem>>, %arg6: memref<2x1x32xf32, #tpu.memory_space<vmem>>, %arg7: memref<2x1x32xf32, #tpu.memory_space<vmem>>, %arg8: memref<2x1x32xf32, #tpu.memory_space<vmem>>, %arg9: memref<2x32x128xf32, #tpu.memory_space<vmem>>, %arg10: memref<2x1x128xf32, #tpu.memory_space<vmem>>, %arg11: memref<2x128x32xf32, #tpu.memory_space<vmem>>, %arg12: memref<2x1x32xf32, #tpu.memory_space<vmem>>, %arg13: memref<2x1x32xf32, #tpu.memory_space<vmem>>, %arg14: memref<2x1x32xf32, #tpu.memory_space<vmem>>, %arg15: memref<32x32xf32, #tpu.memory_space<vmem>>, %arg16: memref<1x32xf32, #tpu.memory_space<vmem>>, %arg17: memref<32x128xf32, #tpu.memory_space<vmem>>, %arg18: memref<1x128xf32, #tpu.memory_space<vmem>>, %arg19: memref<1x1x128xf32, #tpu.memory_space<vmem>>) attributes {dimension_semantics = [#tpu.dimension_semantics<parallel>], iteration_bounds = array<i64: 2>, scalar_prefetch = 0 : i64, scratch_operands = 0 : i64, tpu.core_type = #tpu.core_type<tc>, window_params = [{transform_indices = @transform_0, window_bounds = array<i64: 1, 8, 32>}, {transform_indices = @transform_1, window_bounds = array<i64: 1, 1, 8>}, {pipeline_mode = #tpu.pipeline_mode<synchronous>, transform_indices = @transform_2, window_bounds = array<i64: 2, 32, 96>}, {pipeline_mode = #tpu.pipeline_mode<synchronous>, transform_indices = @transform_3, window_bounds = array<i64: 2, 1, 96>}, {pipeline_mode = #tpu.pipeline_mode<synchronous>, transform_indices = @transform_4, window_bounds = array<i64: 2, 32, 32>}, {pipeline_mode = #tpu.pipeline_mode<synchronous>, transform_indices = @transform_5, window_bounds = array<i64: 2, 1, 32>}, {pipeline_mode = #tpu.pipeline_mode<synchronous>, transform_indices = @transform_6, window_bounds = array<i64: 2, 1, 32>}, {pipeline_mode = #tpu.pipeline_mode<synchronous>, transform_indices = @transform_7, window_bounds = array<i64: 2, 1, 32>}, {pipeline_mode = #tpu.pipeline_mode<synchronous>, transform_indices = @transform_8, window_bounds = array<i64: 2, 32, 128>}, {pipeline_mode = #tpu.pipeline_mode<synchronous>, transform_indices = @transform_9, window_bounds = array<i64: 2, 1, 128>}, {pipeline_mode = #tpu.pipeline_mode<synchronous>, transform_indices = @transform_10, window_bounds = array<i64: 2, 128, 32>}, {pipeline_mode = #tpu.pipeline_mode<synchronous>, transform_indices = @transform_11, window_bounds = array<i64: 2, 1, 32>}, {pipeline_mode = #tpu.pipeline_mode<synchronous>, transform_indices = @transform_12, window_bounds = array<i64: 2, 1, 32>}, {pipeline_mode = #tpu.pipeline_mode<synchronous>, transform_indices = @transform_13, window_bounds = array<i64: 2, 1, 32>}, {pipeline_mode = #tpu.pipeline_mode<synchronous>, transform_indices = @transform_14, window_bounds = array<i64: 32, 32>}, {pipeline_mode = #tpu.pipeline_mode<synchronous>, transform_indices = @transform_15, window_bounds = array<i64: 1, 32>}, {pipeline_mode = #tpu.pipeline_mode<synchronous>, transform_indices = @transform_16, window_bounds = array<i64: 32, 128>}, {pipeline_mode = #tpu.pipeline_mode<synchronous>, transform_indices = @transform_17, window_bounds = array<i64: 1, 128>}, {transform_indices = @transform_18, window_bounds = array<i64: 1, 1, 128>}]} {
    %c0 = arith.constant 0 : index
    %c0_0 = arith.constant 0 : index
    %c0_1 = arith.constant 0 : index
    %0 = vector.load %arg1[%c0, %c0_0, %c0_1] : memref<1x8x32xf32, #tpu.memory_space<vmem>>, vector<1x8x32xf32>
    %1 = vector.shape_cast %0 : vector<1x8x32xf32> to vector<8x32xf32>
    %c0_2 = arith.constant 0 : index
    %c0_3 = arith.constant 0 : index
    %c0_4 = arith.constant 0 : index
    %2 = vector.load %arg2[%c0_2, %c0_3, %c0_4] : memref<1x1x8xf32, #tpu.memory_space<vmem>>, vector<1x1x8xf32>
    %3 = vector.shape_cast %2 : vector<1x1x8xf32> to vector<1x8xf32>
    %cst = arith.constant 1.000000e+00 : f32
    %4 = vector.broadcast %cst : f32 to vector<1x8xf32>
    %5 = arith.subf %4, %3 : vector<1x8xf32>
    %cst_5 = arith.constant -1.000000e+09 : f32
    %6 = vector.broadcast %cst_5 : f32 to vector<1x8xf32>
    %7 = arith.mulf %5, %6 : vector<1x8xf32>
    %c0_6 = arith.constant 0 : index
    %c0_7 = arith.constant 0 : index
    %c0_8 = arith.constant 0 : index
    %8 = vector.load %arg3[%c0_6, %c0_7, %c0_8] : memref<2x32x96xf32, #tpu.memory_space<vmem>>, vector<1x32x96xf32>
    %9 = vector.shape_cast %8 : vector<1x32x96xf32> to vector<32x96xf32>
    %10 = arith.truncf %1 : vector<8x32xf32> to vector<8x32xbf16>
    %11 = arith.truncf %9 : vector<32x96xf32> to vector<32x96xbf16>
    %cst_9 = arith.constant dense<0.000000e+00> : vector<8x96xf32>
    %12 = tpu.matmul %10, %11, %cst_9 {dimension_numbers = #tpu.dot_dimension_numbers<[1], [0], [0], [1], [0, 0, 1, 1], [], []>} : vector<8x32xbf16>, vector<32x96xbf16>, vector<8x96xf32> -> vector<8x96xf32>
    %c0_10 = arith.constant 0 : index
    %c0_11 = arith.constant 0 : index
    %c0_12 = arith.constant 0 : index
    %13 = vector.load %arg4[%c0_10, %c0_11, %c0_12] : memref<2x1x96xf32, #tpu.memory_space<vmem>>, vector<1x1x96xf32>
    %14 = vector.shape_cast %13 : vector<1x1x96xf32> to vector<1x96xf32>
    %15 = vector.broadcast %14 : vector<1x96xf32> to vector<8x96xf32>
    %16 = arith.addf %12, %15 : vector<8x96xf32>
    %c0_13 = arith.constant 0 : index
    %c0_14 = arith.constant 0 : index
    %c0_15 = arith.constant 0 : index
    %17 = vector.load %arg5[%c0_13, %c0_14, %c0_15] : memref<2x32x32xf32, #tpu.memory_space<vmem>>, vector<1x32x32xf32>
    %18 = vector.shape_cast %17 : vector<1x32x32xf32> to vector<32x32xf32>
    %cst_16 = arith.constant 0.000000e+00 : f32
    %19 = vector.broadcast %cst_16 : f32 to vector<8x32xf32>
    %20 = vector.extract_strided_slice %16 {offsets = [0, 0], sizes = [8, 8], strides = [1, 1]} : vector<8x96xf32> to vector<8x8xf32>
    %21 = vector.extract_strided_slice %16 {offsets = [0, 32], sizes = [8, 8], strides = [1, 1]} : vector<8x96xf32> to vector<8x8xf32>
    %22 = vector.extract_strided_slice %16 {offsets = [0, 64], sizes = [8, 8], strides = [1, 1]} : vector<8x96xf32> to vector<8x8xf32>
    %23 = arith.truncf %20 : vector<8x8xf32> to vector<8x8xbf16>
    %24 = arith.truncf %21 : vector<8x8xf32> to vector<8x8xbf16>
    %cst_17 = arith.constant dense<0.000000e+00> : vector<8x8xf32>
    %25 = tpu.matmul %23, %24, %cst_17 {dimension_numbers = #tpu.dot_dimension_numbers<[1], [1], [0], [0], [0, 0, 1, 0], [], []>} : vector<8x8xbf16>, vector<8x8xbf16>, vector<8x8xf32> -> vector<8x8xf32>
    %cst_18 = arith.constant 0.353553385 : f32
    %26 = vector.broadcast %cst_18 : f32 to vector<8x8xf32>
    %27 = arith.mulf %25, %26 : vector<8x8xf32>
    %28 = vector.broadcast %7 : vector<1x8xf32> to vector<8x8xf32>
    %29 = arith.addf %27, %28 : vector<8x8xf32>
    %cst_19 = arith.constant dense<0xFF800000> : vector<8xf32>
    %30 = vector.multi_reduction <maximumf>, %29, %cst_19 [1] : vector<8x8xf32> to vector<8xf32>
    %31 = vector.shape_cast %30 : vector<8xf32> to vector<8x1xf32>
    %32 = vector.broadcast %31 : vector<8x1xf32> to vector<8x8xf32>
    %33 = arith.subf %29, %32 : vector<8x8xf32>
    %34 = math.exp %33 : vector<8x8xf32>
    %cst_20 = arith.constant dense<0.000000e+00> : vector<8xf32>
    %35 = vector.multi_reduction <add>, %34, %cst_20 [1] : vector<8x8xf32> to vector<8xf32>
    %36 = vector.shape_cast %35 : vector<8xf32> to vector<8x1xf32>
    %37 = tpu.reciprocal %36 {approx = true} : vector<8x1xf32> -> vector<8x1xf32>
    %38 = vector.broadcast %37 : vector<8x1xf32> to vector<8x8xf32>
    %39 = arith.mulf %34, %38 : vector<8x8xf32>
    %40 = arith.truncf %39 : vector<8x8xf32> to vector<8x8xbf16>
    %41 = arith.truncf %22 : vector<8x8xf32> to vector<8x8xbf16>
    %cst_21 = arith.constant dense<0.000000e+00> : vector<8x8xf32>
    %42 = tpu.matmul %40, %41, %cst_21 {dimension_numbers = #tpu.dot_dimension_numbers<[1], [0], [0], [1], [0, 0, 1, 1], [], []>} : vector<8x8xbf16>, vector<8x8xbf16>, vector<8x8xf32> -> vector<8x8xf32>
    %43 = vector.extract_strided_slice %18 {offsets = [0, 0], sizes = [8, 32], strides = [1, 1]} : vector<32x32xf32> to vector<8x32xf32>
    %44 = arith.truncf %42 : vector<8x8xf32> to vector<8x8xbf16>
    %45 = arith.truncf %43 : vector<8x32xf32> to vector<8x32xbf16>
    %cst_22 = arith.constant dense<0.000000e+00> : vector<8x32xf32>
    %46 = tpu.matmul %44, %45, %cst_22 {dimension_numbers = #tpu.dot_dimension_numbers<[1], [0], [0], [1], [0, 0, 1, 1], [], []>} : vector<8x8xbf16>, vector<8x32xbf16>, vector<8x32xf32> -> vector<8x32xf32>
    %47 = arith.addf %19, %46 : vector<8x32xf32>
    %48 = vector.extract_strided_slice %16 {offsets = [0, 8], sizes = [8, 8], strides = [1, 1]} : vector<8x96xf32> to vector<8x8xf32>
    %49 = vector.extract_strided_slice %16 {offsets = [0, 40], sizes = [8, 8], strides = [1, 1]} : vector<8x96xf32> to vector<8x8xf32>
    %50 = vector.extract_strided_slice %16 {offsets = [0, 72], sizes = [8, 8], strides = [1, 1]} : vector<8x96xf32> to vector<8x8xf32>
    %51 = arith.truncf %48 : vector<8x8xf32> to vector<8x8xbf16>
    %52 = arith.truncf %49 : vector<8x8xf32> to vector<8x8xbf16>
    %cst_23 = arith.constant dense<0.000000e+00> : vector<8x8xf32>
    %53 = tpu.matmul %51, %52, %cst_23 {dimension_numbers = #tpu.dot_dimension_numbers<[1], [1], [0], [0], [0, 0, 1, 0], [], []>} : vector<8x8xbf16>, vector<8x8xbf16>, vector<8x8xf32> -> vector<8x8xf32>
    %cst_24 = arith.constant 0.353553385 : f32
    %54 = vector.broadcast %cst_24 : f32 to vector<8x8xf32>
    %55 = arith.mulf %53, %54 : vector<8x8xf32>
    %56 = vector.broadcast %7 : vector<1x8xf32> to vector<8x8xf32>
    %57 = arith.addf %55, %56 : vector<8x8xf32>
    %cst_25 = arith.constant dense<0xFF800000> : vector<8xf32>
    %58 = vector.multi_reduction <maximumf>, %57, %cst_25 [1] : vector<8x8xf32> to vector<8xf32>
    %59 = vector.shape_cast %58 : vector<8xf32> to vector<8x1xf32>
    %60 = vector.broadcast %59 : vector<8x1xf32> to vector<8x8xf32>
    %61 = arith.subf %57, %60 : vector<8x8xf32>
    %62 = math.exp %61 : vector<8x8xf32>
    %cst_26 = arith.constant dense<0.000000e+00> : vector<8xf32>
    %63 = vector.multi_reduction <add>, %62, %cst_26 [1] : vector<8x8xf32> to vector<8xf32>
    %64 = vector.shape_cast %63 : vector<8xf32> to vector<8x1xf32>
    %65 = tpu.reciprocal %64 {approx = true} : vector<8x1xf32> -> vector<8x1xf32>
    %66 = vector.broadcast %65 : vector<8x1xf32> to vector<8x8xf32>
    %67 = arith.mulf %62, %66 : vector<8x8xf32>
    %68 = arith.truncf %67 : vector<8x8xf32> to vector<8x8xbf16>
    %69 = arith.truncf %50 : vector<8x8xf32> to vector<8x8xbf16>
    %cst_27 = arith.constant dense<0.000000e+00> : vector<8x8xf32>
    %70 = tpu.matmul %68, %69, %cst_27 {dimension_numbers = #tpu.dot_dimension_numbers<[1], [0], [0], [1], [0, 0, 1, 1], [], []>} : vector<8x8xbf16>, vector<8x8xbf16>, vector<8x8xf32> -> vector<8x8xf32>
    %71 = vector.extract_strided_slice %18 {offsets = [8, 0], sizes = [8, 32], strides = [1, 1]} : vector<32x32xf32> to vector<8x32xf32>
    %72 = arith.truncf %70 : vector<8x8xf32> to vector<8x8xbf16>
    %73 = arith.truncf %71 : vector<8x32xf32> to vector<8x32xbf16>
    %cst_28 = arith.constant dense<0.000000e+00> : vector<8x32xf32>
    %74 = tpu.matmul %72, %73, %cst_28 {dimension_numbers = #tpu.dot_dimension_numbers<[1], [0], [0], [1], [0, 0, 1, 1], [], []>} : vector<8x8xbf16>, vector<8x32xbf16>, vector<8x32xf32> -> vector<8x32xf32>
    %75 = arith.addf %47, %74 : vector<8x32xf32>
    %76 = vector.extract_strided_slice %16 {offsets = [0, 16], sizes = [8, 8], strides = [1, 1]} : vector<8x96xf32> to vector<8x8xf32>
    %77 = vector.extract_strided_slice %16 {offsets = [0, 48], sizes = [8, 8], strides = [1, 1]} : vector<8x96xf32> to vector<8x8xf32>
    %78 = vector.extract_strided_slice %16 {offsets = [0, 80], sizes = [8, 8], strides = [1, 1]} : vector<8x96xf32> to vector<8x8xf32>
    %79 = arith.truncf %76 : vector<8x8xf32> to vector<8x8xbf16>
    %80 = arith.truncf %77 : vector<8x8xf32> to vector<8x8xbf16>
    %cst_29 = arith.constant dense<0.000000e+00> : vector<8x8xf32>
    %81 = tpu.matmul %79, %80, %cst_29 {dimension_numbers = #tpu.dot_dimension_numbers<[1], [1], [0], [0], [0, 0, 1, 0], [], []>} : vector<8x8xbf16>, vector<8x8xbf16>, vector<8x8xf32> -> vector<8x8xf32>
    %cst_30 = arith.constant 0.353553385 : f32
    %82 = vector.broadcast %cst_30 : f32 to vector<8x8xf32>
    %83 = arith.mulf %81, %82 : vector<8x8xf32>
    %84 = vector.broadcast %7 : vector<1x8xf32> to vector<8x8xf32>
    %85 = arith.addf %83, %84 : vector<8x8xf32>
    %cst_31 = arith.constant dense<0xFF800000> : vector<8xf32>
    %86 = vector.multi_reduction <maximumf>, %85, %cst_31 [1] : vector<8x8xf32> to vector<8xf32>
    %87 = vector.shape_cast %86 : vector<8xf32> to vector<8x1xf32>
    %88 = vector.broadcast %87 : vector<8x1xf32> to vector<8x8xf32>
    %89 = arith.subf %85, %88 : vector<8x8xf32>
    %90 = math.exp %89 : vector<8x8xf32>
    %cst_32 = arith.constant dense<0.000000e+00> : vector<8xf32>
    %91 = vector.multi_reduction <add>, %90, %cst_32 [1] : vector<8x8xf32> to vector<8xf32>
    %92 = vector.shape_cast %91 : vector<8xf32> to vector<8x1xf32>
    %93 = tpu.reciprocal %92 {approx = true} : vector<8x1xf32> -> vector<8x1xf32>
    %94 = vector.broadcast %93 : vector<8x1xf32> to vector<8x8xf32>
    %95 = arith.mulf %90, %94 : vector<8x8xf32>
    %96 = arith.truncf %95 : vector<8x8xf32> to vector<8x8xbf16>
    %97 = arith.truncf %78 : vector<8x8xf32> to vector<8x8xbf16>
    %cst_33 = arith.constant dense<0.000000e+00> : vector<8x8xf32>
    %98 = tpu.matmul %96, %97, %cst_33 {dimension_numbers = #tpu.dot_dimension_numbers<[1], [0], [0], [1], [0, 0, 1, 1], [], []>} : vector<8x8xbf16>, vector<8x8xbf16>, vector<8x8xf32> -> vector<8x8xf32>
    %99 = vector.extract_strided_slice %18 {offsets = [16, 0], sizes = [8, 32], strides = [1, 1]} : vector<32x32xf32> to vector<8x32xf32>
    %100 = arith.truncf %98 : vector<8x8xf32> to vector<8x8xbf16>
    %101 = arith.truncf %99 : vector<8x32xf32> to vector<8x32xbf16>
    %cst_34 = arith.constant dense<0.000000e+00> : vector<8x32xf32>
    %102 = tpu.matmul %100, %101, %cst_34 {dimension_numbers = #tpu.dot_dimension_numbers<[1], [0], [0], [1], [0, 0, 1, 1], [], []>} : vector<8x8xbf16>, vector<8x32xbf16>, vector<8x32xf32> -> vector<8x32xf32>
    %103 = arith.addf %75, %102 : vector<8x32xf32>
    %104 = vector.extract_strided_slice %16 {offsets = [0, 24], sizes = [8, 8], strides = [1, 1]} : vector<8x96xf32> to vector<8x8xf32>
    %105 = vector.extract_strided_slice %16 {offsets = [0, 56], sizes = [8, 8], strides = [1, 1]} : vector<8x96xf32> to vector<8x8xf32>
    %106 = vector.extract_strided_slice %16 {offsets = [0, 88], sizes = [8, 8], strides = [1, 1]} : vector<8x96xf32> to vector<8x8xf32>
    %107 = arith.truncf %104 : vector<8x8xf32> to vector<8x8xbf16>
    %108 = arith.truncf %105 : vector<8x8xf32> to vector<8x8xbf16>
    %cst_35 = arith.constant dense<0.000000e+00> : vector<8x8xf32>
    %109 = tpu.matmul %107, %108, %cst_35 {dimension_numbers = #tpu.dot_dimension_numbers<[1], [1], [0], [0], [0, 0, 1, 0], [], []>} : vector<8x8xbf16>, vector<8x8xbf16>, vector<8x8xf32> -> vector<8x8xf32>
    %cst_36 = arith.constant 0.353553385 : f32
    %110 = vector.broadcast %cst_36 : f32 to vector<8x8xf32>
    %111 = arith.mulf %109, %110 : vector<8x8xf32>
    %112 = vector.broadcast %7 : vector<1x8xf32> to vector<8x8xf32>
    %113 = arith.addf %111, %112 : vector<8x8xf32>
    %cst_37 = arith.constant dense<0xFF800000> : vector<8xf32>
    %114 = vector.multi_reduction <maximumf>, %113, %cst_37 [1] : vector<8x8xf32> to vector<8xf32>
    %115 = vector.shape_cast %114 : vector<8xf32> to vector<8x1xf32>
    %116 = vector.broadcast %115 : vector<8x1xf32> to vector<8x8xf32>
    %117 = arith.subf %113, %116 : vector<8x8xf32>
    %118 = math.exp %117 : vector<8x8xf32>
    %cst_38 = arith.constant dense<0.000000e+00> : vector<8xf32>
    %119 = vector.multi_reduction <add>, %118, %cst_38 [1] : vector<8x8xf32> to vector<8xf32>
    %120 = vector.shape_cast %119 : vector<8xf32> to vector<8x1xf32>
    %121 = tpu.reciprocal %120 {approx = true} : vector<8x1xf32> -> vector<8x1xf32>
    %122 = vector.broadcast %121 : vector<8x1xf32> to vector<8x8xf32>
    %123 = arith.mulf %118, %122 : vector<8x8xf32>
    %124 = arith.truncf %123 : vector<8x8xf32> to vector<8x8xbf16>
    %125 = arith.truncf %106 : vector<8x8xf32> to vector<8x8xbf16>
    %cst_39 = arith.constant dense<0.000000e+00> : vector<8x8xf32>
    %126 = tpu.matmul %124, %125, %cst_39 {dimension_numbers = #tpu.dot_dimension_numbers<[1], [0], [0], [1], [0, 0, 1, 1], [], []>} : vector<8x8xbf16>, vector<8x8xbf16>, vector<8x8xf32> -> vector<8x8xf32>
    %127 = vector.extract_strided_slice %18 {offsets = [24, 0], sizes = [8, 32], strides = [1, 1]} : vector<32x32xf32> to vector<8x32xf32>
    %128 = arith.truncf %126 : vector<8x8xf32> to vector<8x8xbf16>
    %129 = arith.truncf %127 : vector<8x32xf32> to vector<8x32xbf16>
    %cst_40 = arith.constant dense<0.000000e+00> : vector<8x32xf32>
    %130 = tpu.matmul %128, %129, %cst_40 {dimension_numbers = #tpu.dot_dimension_numbers<[1], [0], [0], [1], [0, 0, 1, 1], [], []>} : vector<8x8xbf16>, vector<8x32xbf16>, vector<8x32xf32> -> vector<8x32xf32>
    %131 = arith.addf %103, %130 : vector<8x32xf32>
    %c0_41 = arith.constant 0 : index
    %c0_42 = arith.constant 0 : index
    %c0_43 = arith.constant 0 : index
    %132 = vector.load %arg6[%c0_41, %c0_42, %c0_43] : memref<2x1x32xf32, #tpu.memory_space<vmem>>, vector<1x1x32xf32>
    %133 = vector.shape_cast %132 : vector<1x1x32xf32> to vector<1x32xf32>
    %134 = vector.broadcast %133 : vector<1x32xf32> to vector<8x32xf32>
    %135 = arith.addf %131, %134 : vector<8x32xf32>
    %136 = arith.addf %135, %1 : vector<8x32xf32>
    %c0_44 = arith.constant 0 : index
    %c0_45 = arith.constant 0 : index
    %c0_46 = arith.constant 0 : index
    %137 = vector.load %arg7[%c0_44, %c0_45, %c0_46] : memref<2x1x32xf32, #tpu.memory_space<vmem>>, vector<1x1x32xf32>
    %138 = vector.shape_cast %137 : vector<1x1x32xf32> to vector<1x32xf32>
    %c0_47 = arith.constant 0 : index
    %c0_48 = arith.constant 0 : index
    %c0_49 = arith.constant 0 : index
    %139 = vector.load %arg8[%c0_47, %c0_48, %c0_49] : memref<2x1x32xf32, #tpu.memory_space<vmem>>, vector<1x1x32xf32>
    %140 = vector.shape_cast %139 : vector<1x1x32xf32> to vector<1x32xf32>
    %cst_50 = arith.constant dense<0.000000e+00> : vector<8xf32>
    %141 = vector.multi_reduction <add>, %136, %cst_50 [1] : vector<8x32xf32> to vector<8xf32>
    %142 = vector.shape_cast %141 : vector<8xf32> to vector<8x1xf32>
    %cst_51 = arith.constant 3.200000e+01 : f32
    %143 = vector.broadcast %cst_51 : f32 to vector<8x1xf32>
    %144 = arith.divf %142, %143 : vector<8x1xf32>
    %145 = vector.broadcast %144 : vector<8x1xf32> to vector<8x32xf32>
    %146 = arith.subf %136, %145 : vector<8x32xf32>
    %147 = arith.mulf %146, %146 : vector<8x32xf32>
    %cst_52 = arith.constant dense<0.000000e+00> : vector<8xf32>
    %148 = vector.multi_reduction <add>, %147, %cst_52 [1] : vector<8x32xf32> to vector<8xf32>
    %149 = vector.shape_cast %148 : vector<8xf32> to vector<8x1xf32>
    %cst_53 = arith.constant 3.200000e+01 : f32
    %150 = vector.broadcast %cst_53 : f32 to vector<8x1xf32>
    %151 = arith.divf %149, %150 : vector<8x1xf32>
    %152 = vector.broadcast %144 : vector<8x1xf32> to vector<8x32xf32>
    %153 = arith.subf %136, %152 : vector<8x32xf32>
    %cst_54 = arith.constant 9.99999996E-13 : f32
    %154 = vector.broadcast %cst_54 : f32 to vector<8x1xf32>
    %155 = arith.addf %151, %154 : vector<8x1xf32>
    %156 = math.rsqrt %155 : vector<8x1xf32>
    %157 = vector.broadcast %156 : vector<8x1xf32> to vector<8x32xf32>
    %158 = arith.mulf %153, %157 : vector<8x32xf32>
    %159 = vector.broadcast %138 : vector<1x32xf32> to vector<8x32xf32>
    %160 = arith.mulf %158, %159 : vector<8x32xf32>
    %161 = vector.broadcast %140 : vector<1x32xf32> to vector<8x32xf32>
    %162 = arith.addf %160, %161 : vector<8x32xf32>
    %c0_55 = arith.constant 0 : index
    %c0_56 = arith.constant 0 : index
    %c0_57 = arith.constant 0 : index
    %163 = vector.load %arg9[%c0_55, %c0_56, %c0_57] : memref<2x32x128xf32, #tpu.memory_space<vmem>>, vector<1x32x128xf32>
    %164 = vector.shape_cast %163 : vector<1x32x128xf32> to vector<32x128xf32>
    %165 = arith.truncf %162 : vector<8x32xf32> to vector<8x32xbf16>
    %166 = arith.truncf %164 : vector<32x128xf32> to vector<32x128xbf16>
    %cst_58 = arith.constant dense<0.000000e+00> : vector<8x128xf32>
    %167 = tpu.matmul %165, %166, %cst_58 {dimension_numbers = #tpu.dot_dimension_numbers<[1], [0], [0], [1], [0, 0, 1, 1], [], []>} : vector<8x32xbf16>, vector<32x128xbf16>, vector<8x128xf32> -> vector<8x128xf32>
    %c0_59 = arith.constant 0 : index
    %c0_60 = arith.constant 0 : index
    %c0_61 = arith.constant 0 : index
    %168 = vector.load %arg10[%c0_59, %c0_60, %c0_61] : memref<2x1x128xf32, #tpu.memory_space<vmem>>, vector<1x1x128xf32>
    %169 = vector.shape_cast %168 : vector<1x1x128xf32> to vector<1x128xf32>
    %170 = vector.broadcast %169 : vector<1x128xf32> to vector<8x128xf32>
    %171 = arith.addf %167, %170 : vector<8x128xf32>
    %172 = arith.mulf %171, %171 : vector<8x128xf32>
    %173 = arith.mulf %171, %172 : vector<8x128xf32>
    %cst_62 = arith.constant 4.471500e-02 : f32
    %174 = vector.broadcast %cst_62 : f32 to vector<8x128xf32>
    %175 = arith.mulf %174, %173 : vector<8x128xf32>
    %176 = arith.addf %171, %175 : vector<8x128xf32>
    %cst_63 = arith.constant 0.797884583 : f32
    %177 = vector.broadcast %cst_63 : f32 to vector<8x128xf32>
    %178 = arith.mulf %177, %176 : vector<8x128xf32>
    %179 = math.tanh %178 : vector<8x128xf32>
    %cst_64 = arith.constant 1.000000e+00 : f32
    %180 = vector.broadcast %cst_64 : f32 to vector<8x128xf32>
    %181 = arith.addf %180, %179 : vector<8x128xf32>
    %cst_65 = arith.constant 5.000000e-01 : f32
    %182 = vector.broadcast %cst_65 : f32 to vector<8x128xf32>
    %183 = arith.mulf %182, %181 : vector<8x128xf32>
    %184 = arith.mulf %171, %183 : vector<8x128xf32>
    %c0_66 = arith.constant 0 : index
    %c0_67 = arith.constant 0 : index
    %c0_68 = arith.constant 0 : index
    %185 = vector.load %arg11[%c0_66, %c0_67, %c0_68] : memref<2x128x32xf32, #tpu.memory_space<vmem>>, vector<1x128x32xf32>
    %186 = vector.shape_cast %185 : vector<1x128x32xf32> to vector<128x32xf32>
    %187 = arith.truncf %184 : vector<8x128xf32> to vector<8x128xbf16>
    %188 = arith.truncf %186 : vector<128x32xf32> to vector<128x32xbf16>
    %cst_69 = arith.constant dense<0.000000e+00> : vector<8x32xf32>
    %189 = tpu.matmul %187, %188, %cst_69 {dimension_numbers = #tpu.dot_dimension_numbers<[1], [0], [0], [1], [0, 0, 1, 1], [], []>} : vector<8x128xbf16>, vector<128x32xbf16>, vector<8x32xf32> -> vector<8x32xf32>
    %c0_70 = arith.constant 0 : index
    %c0_71 = arith.constant 0 : index
    %c0_72 = arith.constant 0 : index
    %190 = vector.load %arg12[%c0_70, %c0_71, %c0_72] : memref<2x1x32xf32, #tpu.memory_space<vmem>>, vector<1x1x32xf32>
    %191 = vector.shape_cast %190 : vector<1x1x32xf32> to vector<1x32xf32>
    %192 = vector.broadcast %191 : vector<1x32xf32> to vector<8x32xf32>
    %193 = arith.addf %189, %192 : vector<8x32xf32>
    %194 = arith.addf %193, %162 : vector<8x32xf32>
    %c0_73 = arith.constant 0 : index
    %c0_74 = arith.constant 0 : index
    %c0_75 = arith.constant 0 : index
    %195 = vector.load %arg13[%c0_73, %c0_74, %c0_75] : memref<2x1x32xf32, #tpu.memory_space<vmem>>, vector<1x1x32xf32>
    %196 = vector.shape_cast %195 : vector<1x1x32xf32> to vector<1x32xf32>
    %c0_76 = arith.constant 0 : index
    %c0_77 = arith.constant 0 : index
    %c0_78 = arith.constant 0 : index
    %197 = vector.load %arg14[%c0_76, %c0_77, %c0_78] : memref<2x1x32xf32, #tpu.memory_space<vmem>>, vector<1x1x32xf32>
    %198 = vector.shape_cast %197 : vector<1x1x32xf32> to vector<1x32xf32>
    %cst_79 = arith.constant dense<0.000000e+00> : vector<8xf32>
    %199 = vector.multi_reduction <add>, %194, %cst_79 [1] : vector<8x32xf32> to vector<8xf32>
    %200 = vector.shape_cast %199 : vector<8xf32> to vector<8x1xf32>
    %cst_80 = arith.constant 3.200000e+01 : f32
    %201 = vector.broadcast %cst_80 : f32 to vector<8x1xf32>
    %202 = arith.divf %200, %201 : vector<8x1xf32>
    %203 = vector.broadcast %202 : vector<8x1xf32> to vector<8x32xf32>
    %204 = arith.subf %194, %203 : vector<8x32xf32>
    %205 = arith.mulf %204, %204 : vector<8x32xf32>
    %cst_81 = arith.constant dense<0.000000e+00> : vector<8xf32>
    %206 = vector.multi_reduction <add>, %205, %cst_81 [1] : vector<8x32xf32> to vector<8xf32>
    %207 = vector.shape_cast %206 : vector<8xf32> to vector<8x1xf32>
    %cst_82 = arith.constant 3.200000e+01 : f32
    %208 = vector.broadcast %cst_82 : f32 to vector<8x1xf32>
    %209 = arith.divf %207, %208 : vector<8x1xf32>
    %210 = vector.broadcast %202 : vector<8x1xf32> to vector<8x32xf32>
    %211 = arith.subf %194, %210 : vector<8x32xf32>
    %cst_83 = arith.constant 9.99999996E-13 : f32
    %212 = vector.broadcast %cst_83 : f32 to vector<8x1xf32>
    %213 = arith.addf %209, %212 : vector<8x1xf32>
    %214 = math.rsqrt %213 : vector<8x1xf32>
    %215 = vector.broadcast %214 : vector<8x1xf32> to vector<8x32xf32>
    %216 = arith.mulf %211, %215 : vector<8x32xf32>
    %217 = vector.broadcast %196 : vector<1x32xf32> to vector<8x32xf32>
    %218 = arith.mulf %216, %217 : vector<8x32xf32>
    %219 = vector.broadcast %198 : vector<1x32xf32> to vector<8x32xf32>
    %220 = arith.addf %218, %219 : vector<8x32xf32>
    %c1 = arith.constant 1 : index
    %c0_84 = arith.constant 0 : index
    %c0_85 = arith.constant 0 : index
    %221 = vector.load %arg3[%c1, %c0_84, %c0_85] : memref<2x32x96xf32, #tpu.memory_space<vmem>>, vector<1x32x96xf32>
    %222 = vector.shape_cast %221 : vector<1x32x96xf32> to vector<32x96xf32>
    %223 = arith.truncf %220 : vector<8x32xf32> to vector<8x32xbf16>
    %224 = arith.truncf %222 : vector<32x96xf32> to vector<32x96xbf16>
    %cst_86 = arith.constant dense<0.000000e+00> : vector<8x96xf32>
    %225 = tpu.matmul %223, %224, %cst_86 {dimension_numbers = #tpu.dot_dimension_numbers<[1], [0], [0], [1], [0, 0, 1, 1], [], []>} : vector<8x32xbf16>, vector<32x96xbf16>, vector<8x96xf32> -> vector<8x96xf32>
    %c1_87 = arith.constant 1 : index
    %c0_88 = arith.constant 0 : index
    %c0_89 = arith.constant 0 : index
    %226 = vector.load %arg4[%c1_87, %c0_88, %c0_89] : memref<2x1x96xf32, #tpu.memory_space<vmem>>, vector<1x1x96xf32>
    %227 = vector.shape_cast %226 : vector<1x1x96xf32> to vector<1x96xf32>
    %228 = vector.broadcast %227 : vector<1x96xf32> to vector<8x96xf32>
    %229 = arith.addf %225, %228 : vector<8x96xf32>
    %c1_90 = arith.constant 1 : index
    %c0_91 = arith.constant 0 : index
    %c0_92 = arith.constant 0 : index
    %230 = vector.load %arg5[%c1_90, %c0_91, %c0_92] : memref<2x32x32xf32, #tpu.memory_space<vmem>>, vector<1x32x32xf32>
    %231 = vector.shape_cast %230 : vector<1x32x32xf32> to vector<32x32xf32>
    %cst_93 = arith.constant 0.000000e+00 : f32
    %232 = vector.broadcast %cst_93 : f32 to vector<8x32xf32>
    %233 = vector.extract_strided_slice %229 {offsets = [0, 0], sizes = [8, 8], strides = [1, 1]} : vector<8x96xf32> to vector<8x8xf32>
    %234 = vector.extract_strided_slice %229 {offsets = [0, 32], sizes = [8, 8], strides = [1, 1]} : vector<8x96xf32> to vector<8x8xf32>
    %235 = vector.extract_strided_slice %229 {offsets = [0, 64], sizes = [8, 8], strides = [1, 1]} : vector<8x96xf32> to vector<8x8xf32>
    %236 = arith.truncf %233 : vector<8x8xf32> to vector<8x8xbf16>
    %237 = arith.truncf %234 : vector<8x8xf32> to vector<8x8xbf16>
    %cst_94 = arith.constant dense<0.000000e+00> : vector<8x8xf32>
    %238 = tpu.matmul %236, %237, %cst_94 {dimension_numbers = #tpu.dot_dimension_numbers<[1], [1], [0], [0], [0, 0, 1, 0], [], []>} : vector<8x8xbf16>, vector<8x8xbf16>, vector<8x8xf32> -> vector<8x8xf32>
    %cst_95 = arith.constant 0.353553385 : f32
    %239 = vector.broadcast %cst_95 : f32 to vector<8x8xf32>
    %240 = arith.mulf %238, %239 : vector<8x8xf32>
    %241 = vector.broadcast %7 : vector<1x8xf32> to vector<8x8xf32>
    %242 = arith.addf %240, %241 : vector<8x8xf32>
    %cst_96 = arith.constant dense<0xFF800000> : vector<8xf32>
    %243 = vector.multi_reduction <maximumf>, %242, %cst_96 [1] : vector<8x8xf32> to vector<8xf32>
    %244 = vector.shape_cast %243 : vector<8xf32> to vector<8x1xf32>
    %245 = vector.broadcast %244 : vector<8x1xf32> to vector<8x8xf32>
    %246 = arith.subf %242, %245 : vector<8x8xf32>
    %247 = math.exp %246 : vector<8x8xf32>
    %cst_97 = arith.constant dense<0.000000e+00> : vector<8xf32>
    %248 = vector.multi_reduction <add>, %247, %cst_97 [1] : vector<8x8xf32> to vector<8xf32>
    %249 = vector.shape_cast %248 : vector<8xf32> to vector<8x1xf32>
    %250 = tpu.reciprocal %249 {approx = true} : vector<8x1xf32> -> vector<8x1xf32>
    %251 = vector.broadcast %250 : vector<8x1xf32> to vector<8x8xf32>
    %252 = arith.mulf %247, %251 : vector<8x8xf32>
    %253 = arith.truncf %252 : vector<8x8xf32> to vector<8x8xbf16>
    %254 = arith.truncf %235 : vector<8x8xf32> to vector<8x8xbf16>
    %cst_98 = arith.constant dense<0.000000e+00> : vector<8x8xf32>
    %255 = tpu.matmul %253, %254, %cst_98 {dimension_numbers = #tpu.dot_dimension_numbers<[1], [0], [0], [1], [0, 0, 1, 1], [], []>} : vector<8x8xbf16>, vector<8x8xbf16>, vector<8x8xf32> -> vector<8x8xf32>
    %256 = vector.extract_strided_slice %231 {offsets = [0, 0], sizes = [8, 32], strides = [1, 1]} : vector<32x32xf32> to vector<8x32xf32>
    %257 = arith.truncf %255 : vector<8x8xf32> to vector<8x8xbf16>
    %258 = arith.truncf %256 : vector<8x32xf32> to vector<8x32xbf16>
    %cst_99 = arith.constant dense<0.000000e+00> : vector<8x32xf32>
    %259 = tpu.matmul %257, %258, %cst_99 {dimension_numbers = #tpu.dot_dimension_numbers<[1], [0], [0], [1], [0, 0, 1, 1], [], []>} : vector<8x8xbf16>, vector<8x32xbf16>, vector<8x32xf32> -> vector<8x32xf32>
    %260 = arith.addf %232, %259 : vector<8x32xf32>
    %261 = vector.extract_strided_slice %229 {offsets = [0, 8], sizes = [8, 8], strides = [1, 1]} : vector<8x96xf32> to vector<8x8xf32>
    %262 = vector.extract_strided_slice %229 {offsets = [0, 40], sizes = [8, 8], strides = [1, 1]} : vector<8x96xf32> to vector<8x8xf32>
    %263 = vector.extract_strided_slice %229 {offsets = [0, 72], sizes = [8, 8], strides = [1, 1]} : vector<8x96xf32> to vector<8x8xf32>
    %264 = arith.truncf %261 : vector<8x8xf32> to vector<8x8xbf16>
    %265 = arith.truncf %262 : vector<8x8xf32> to vector<8x8xbf16>
    %cst_100 = arith.constant dense<0.000000e+00> : vector<8x8xf32>
    %266 = tpu.matmul %264, %265, %cst_100 {dimension_numbers = #tpu.dot_dimension_numbers<[1], [1], [0], [0], [0, 0, 1, 0], [], []>} : vector<8x8xbf16>, vector<8x8xbf16>, vector<8x8xf32> -> vector<8x8xf32>
    %cst_101 = arith.constant 0.353553385 : f32
    %267 = vector.broadcast %cst_101 : f32 to vector<8x8xf32>
    %268 = arith.mulf %266, %267 : vector<8x8xf32>
    %269 = vector.broadcast %7 : vector<1x8xf32> to vector<8x8xf32>
    %270 = arith.addf %268, %269 : vector<8x8xf32>
    %cst_102 = arith.constant dense<0xFF800000> : vector<8xf32>
    %271 = vector.multi_reduction <maximumf>, %270, %cst_102 [1] : vector<8x8xf32> to vector<8xf32>
    %272 = vector.shape_cast %271 : vector<8xf32> to vector<8x1xf32>
    %273 = vector.broadcast %272 : vector<8x1xf32> to vector<8x8xf32>
    %274 = arith.subf %270, %273 : vector<8x8xf32>
    %275 = math.exp %274 : vector<8x8xf32>
    %cst_103 = arith.constant dense<0.000000e+00> : vector<8xf32>
    %276 = vector.multi_reduction <add>, %275, %cst_103 [1] : vector<8x8xf32> to vector<8xf32>
    %277 = vector.shape_cast %276 : vector<8xf32> to vector<8x1xf32>
    %278 = tpu.reciprocal %277 {approx = true} : vector<8x1xf32> -> vector<8x1xf32>
    %279 = vector.broadcast %278 : vector<8x1xf32> to vector<8x8xf32>
    %280 = arith.mulf %275, %279 : vector<8x8xf32>
    %281 = arith.truncf %280 : vector<8x8xf32> to vector<8x8xbf16>
    %282 = arith.truncf %263 : vector<8x8xf32> to vector<8x8xbf16>
    %cst_104 = arith.constant dense<0.000000e+00> : vector<8x8xf32>
    %283 = tpu.matmul %281, %282, %cst_104 {dimension_numbers = #tpu.dot_dimension_numbers<[1], [0], [0], [1], [0, 0, 1, 1], [], []>} : vector<8x8xbf16>, vector<8x8xbf16>, vector<8x8xf32> -> vector<8x8xf32>
    %284 = vector.extract_strided_slice %231 {offsets = [8, 0], sizes = [8, 32], strides = [1, 1]} : vector<32x32xf32> to vector<8x32xf32>
    %285 = arith.truncf %283 : vector<8x8xf32> to vector<8x8xbf16>
    %286 = arith.truncf %284 : vector<8x32xf32> to vector<8x32xbf16>
    %cst_105 = arith.constant dense<0.000000e+00> : vector<8x32xf32>
    %287 = tpu.matmul %285, %286, %cst_105 {dimension_numbers = #tpu.dot_dimension_numbers<[1], [0], [0], [1], [0, 0, 1, 1], [], []>} : vector<8x8xbf16>, vector<8x32xbf16>, vector<8x32xf32> -> vector<8x32xf32>
    %288 = arith.addf %260, %287 : vector<8x32xf32>
    %289 = vector.extract_strided_slice %229 {offsets = [0, 16], sizes = [8, 8], strides = [1, 1]} : vector<8x96xf32> to vector<8x8xf32>
    %290 = vector.extract_strided_slice %229 {offsets = [0, 48], sizes = [8, 8], strides = [1, 1]} : vector<8x96xf32> to vector<8x8xf32>
    %291 = vector.extract_strided_slice %229 {offsets = [0, 80], sizes = [8, 8], strides = [1, 1]} : vector<8x96xf32> to vector<8x8xf32>
    %292 = arith.truncf %289 : vector<8x8xf32> to vector<8x8xbf16>
    %293 = arith.truncf %290 : vector<8x8xf32> to vector<8x8xbf16>
    %cst_106 = arith.constant dense<0.000000e+00> : vector<8x8xf32>
    %294 = tpu.matmul %292, %293, %cst_106 {dimension_numbers = #tpu.dot_dimension_numbers<[1], [1], [0], [0], [0, 0, 1, 0], [], []>} : vector<8x8xbf16>, vector<8x8xbf16>, vector<8x8xf32> -> vector<8x8xf32>
    %cst_107 = arith.constant 0.353553385 : f32
    %295 = vector.broadcast %cst_107 : f32 to vector<8x8xf32>
    %296 = arith.mulf %294, %295 : vector<8x8xf32>
    %297 = vector.broadcast %7 : vector<1x8xf32> to vector<8x8xf32>
    %298 = arith.addf %296, %297 : vector<8x8xf32>
    %cst_108 = arith.constant dense<0xFF800000> : vector<8xf32>
    %299 = vector.multi_reduction <maximumf>, %298, %cst_108 [1] : vector<8x8xf32> to vector<8xf32>
    %300 = vector.shape_cast %299 : vector<8xf32> to vector<8x1xf32>
    %301 = vector.broadcast %300 : vector<8x1xf32> to vector<8x8xf32>
    %302 = arith.subf %298, %301 : vector<8x8xf32>
    %303 = math.exp %302 : vector<8x8xf32>
    %cst_109 = arith.constant dense<0.000000e+00> : vector<8xf32>
    %304 = vector.multi_reduction <add>, %303, %cst_109 [1] : vector<8x8xf32> to vector<8xf32>
    %305 = vector.shape_cast %304 : vector<8xf32> to vector<8x1xf32>
    %306 = tpu.reciprocal %305 {approx = true} : vector<8x1xf32> -> vector<8x1xf32>
    %307 = vector.broadcast %306 : vector<8x1xf32> to vector<8x8xf32>
    %308 = arith.mulf %303, %307 : vector<8x8xf32>
    %309 = arith.truncf %308 : vector<8x8xf32> to vector<8x8xbf16>
    %310 = arith.truncf %291 : vector<8x8xf32> to vector<8x8xbf16>
    %cst_110 = arith.constant dense<0.000000e+00> : vector<8x8xf32>
    %311 = tpu.matmul %309, %310, %cst_110 {dimension_numbers = #tpu.dot_dimension_numbers<[1], [0], [0], [1], [0, 0, 1, 1], [], []>} : vector<8x8xbf16>, vector<8x8xbf16>, vector<8x8xf32> -> vector<8x8xf32>
    %312 = vector.extract_strided_slice %231 {offsets = [16, 0], sizes = [8, 32], strides = [1, 1]} : vector<32x32xf32> to vector<8x32xf32>
    %313 = arith.truncf %311 : vector<8x8xf32> to vector<8x8xbf16>
    %314 = arith.truncf %312 : vector<8x32xf32> to vector<8x32xbf16>
    %cst_111 = arith.constant dense<0.000000e+00> : vector<8x32xf32>
    %315 = tpu.matmul %313, %314, %cst_111 {dimension_numbers = #tpu.dot_dimension_numbers<[1], [0], [0], [1], [0, 0, 1, 1], [], []>} : vector<8x8xbf16>, vector<8x32xbf16>, vector<8x32xf32> -> vector<8x32xf32>
    %316 = arith.addf %288, %315 : vector<8x32xf32>
    %317 = vector.extract_strided_slice %229 {offsets = [0, 24], sizes = [8, 8], strides = [1, 1]} : vector<8x96xf32> to vector<8x8xf32>
    %318 = vector.extract_strided_slice %229 {offsets = [0, 56], sizes = [8, 8], strides = [1, 1]} : vector<8x96xf32> to vector<8x8xf32>
    %319 = vector.extract_strided_slice %229 {offsets = [0, 88], sizes = [8, 8], strides = [1, 1]} : vector<8x96xf32> to vector<8x8xf32>
    %320 = arith.truncf %317 : vector<8x8xf32> to vector<8x8xbf16>
    %321 = arith.truncf %318 : vector<8x8xf32> to vector<8x8xbf16>
    %cst_112 = arith.constant dense<0.000000e+00> : vector<8x8xf32>
    %322 = tpu.matmul %320, %321, %cst_112 {dimension_numbers = #tpu.dot_dimension_numbers<[1], [1], [0], [0], [0, 0, 1, 0], [], []>} : vector<8x8xbf16>, vector<8x8xbf16>, vector<8x8xf32> -> vector<8x8xf32>
    %cst_113 = arith.constant 0.353553385 : f32
    %323 = vector.broadcast %cst_113 : f32 to vector<8x8xf32>
    %324 = arith.mulf %322, %323 : vector<8x8xf32>
    %325 = vector.broadcast %7 : vector<1x8xf32> to vector<8x8xf32>
    %326 = arith.addf %324, %325 : vector<8x8xf32>
    %cst_114 = arith.constant dense<0xFF800000> : vector<8xf32>
    %327 = vector.multi_reduction <maximumf>, %326, %cst_114 [1] : vector<8x8xf32> to vector<8xf32>
    %328 = vector.shape_cast %327 : vector<8xf32> to vector<8x1xf32>
    %329 = vector.broadcast %328 : vector<8x1xf32> to vector<8x8xf32>
    %330 = arith.subf %326, %329 : vector<8x8xf32>
    %331 = math.exp %330 : vector<8x8xf32>
    %cst_115 = arith.constant dense<0.000000e+00> : vector<8xf32>
    %332 = vector.multi_reduction <add>, %331, %cst_115 [1] : vector<8x8xf32> to vector<8xf32>
    %333 = vector.shape_cast %332 : vector<8xf32> to vector<8x1xf32>
    %334 = tpu.reciprocal %333 {approx = true} : vector<8x1xf32> -> vector<8x1xf32>
    %335 = vector.broadcast %334 : vector<8x1xf32> to vector<8x8xf32>
    %336 = arith.mulf %331, %335 : vector<8x8xf32>
    %337 = arith.truncf %336 : vector<8x8xf32> to vector<8x8xbf16>
    %338 = arith.truncf %319 : vector<8x8xf32> to vector<8x8xbf16>
    %cst_116 = arith.constant dense<0.000000e+00> : vector<8x8xf32>
    %339 = tpu.matmul %337, %338, %cst_116 {dimension_numbers = #tpu.dot_dimension_numbers<[1], [0], [0], [1], [0, 0, 1, 1], [], []>} : vector<8x8xbf16>, vector<8x8xbf16>, vector<8x8xf32> -> vector<8x8xf32>
    %340 = vector.extract_strided_slice %231 {offsets = [24, 0], sizes = [8, 32], strides = [1, 1]} : vector<32x32xf32> to vector<8x32xf32>
    %341 = arith.truncf %339 : vector<8x8xf32> to vector<8x8xbf16>
    %342 = arith.truncf %340 : vector<8x32xf32> to vector<8x32xbf16>
    %cst_117 = arith.constant dense<0.000000e+00> : vector<8x32xf32>
    %343 = tpu.matmul %341, %342, %cst_117 {dimension_numbers = #tpu.dot_dimension_numbers<[1], [0], [0], [1], [0, 0, 1, 1], [], []>} : vector<8x8xbf16>, vector<8x32xbf16>, vector<8x32xf32> -> vector<8x32xf32>
    %344 = arith.addf %316, %343 : vector<8x32xf32>
    %c1_118 = arith.constant 1 : index
    %c0_119 = arith.constant 0 : index
    %c0_120 = arith.constant 0 : index
    %345 = vector.load %arg6[%c1_118, %c0_119, %c0_120] : memref<2x1x32xf32, #tpu.memory_space<vmem>>, vector<1x1x32xf32>
    %346 = vector.shape_cast %345 : vector<1x1x32xf32> to vector<1x32xf32>
    %347 = vector.broadcast %346 : vector<1x32xf32> to vector<8x32xf32>
    %348 = arith.addf %344, %347 : vector<8x32xf32>
    %349 = arith.addf %348, %220 : vector<8x32xf32>
    %c1_121 = arith.constant 1 : index
    %c0_122 = arith.constant 0 : index
    %c0_123 = arith.constant 0 : index
    %350 = vector.load %arg7[%c1_121, %c0_122, %c0_123] : memref<2x1x32xf32, #tpu.memory_space<vmem>>, vector<1x1x32xf32>
    %351 = vector.shape_cast %350 : vector<1x1x32xf32> to vector<1x32xf32>
    %c1_124 = arith.constant 1 : index
    %c0_125 = arith.constant 0 : index
    %c0_126 = arith.constant 0 : index
    %352 = vector.load %arg8[%c1_124, %c0_125, %c0_126] : memref<2x1x32xf32, #tpu.memory_space<vmem>>, vector<1x1x32xf32>
    %353 = vector.shape_cast %352 : vector<1x1x32xf32> to vector<1x32xf32>
    %cst_127 = arith.constant dense<0.000000e+00> : vector<8xf32>
    %354 = vector.multi_reduction <add>, %349, %cst_127 [1] : vector<8x32xf32> to vector<8xf32>
    %355 = vector.shape_cast %354 : vector<8xf32> to vector<8x1xf32>
    %cst_128 = arith.constant 3.200000e+01 : f32
    %356 = vector.broadcast %cst_128 : f32 to vector<8x1xf32>
    %357 = arith.divf %355, %356 : vector<8x1xf32>
    %358 = vector.broadcast %357 : vector<8x1xf32> to vector<8x32xf32>
    %359 = arith.subf %349, %358 : vector<8x32xf32>
    %360 = arith.mulf %359, %359 : vector<8x32xf32>
    %cst_129 = arith.constant dense<0.000000e+00> : vector<8xf32>
    %361 = vector.multi_reduction <add>, %360, %cst_129 [1] : vector<8x32xf32> to vector<8xf32>
    %362 = vector.shape_cast %361 : vector<8xf32> to vector<8x1xf32>
    %cst_130 = arith.constant 3.200000e+01 : f32
    %363 = vector.broadcast %cst_130 : f32 to vector<8x1xf32>
    %364 = arith.divf %362, %363 : vector<8x1xf32>
    %365 = vector.broadcast %357 : vector<8x1xf32> to vector<8x32xf32>
    %366 = arith.subf %349, %365 : vector<8x32xf32>
    %cst_131 = arith.constant 9.99999996E-13 : f32
    %367 = vector.broadcast %cst_131 : f32 to vector<8x1xf32>
    %368 = arith.addf %364, %367 : vector<8x1xf32>
    %369 = math.rsqrt %368 : vector<8x1xf32>
    %370 = vector.broadcast %369 : vector<8x1xf32> to vector<8x32xf32>
    %371 = arith.mulf %366, %370 : vector<8x32xf32>
    %372 = vector.broadcast %351 : vector<1x32xf32> to vector<8x32xf32>
    %373 = arith.mulf %371, %372 : vector<8x32xf32>
    %374 = vector.broadcast %353 : vector<1x32xf32> to vector<8x32xf32>
    %375 = arith.addf %373, %374 : vector<8x32xf32>
    %c1_132 = arith.constant 1 : index
    %c0_133 = arith.constant 0 : index
    %c0_134 = arith.constant 0 : index
    %376 = vector.load %arg9[%c1_132, %c0_133, %c0_134] : memref<2x32x128xf32, #tpu.memory_space<vmem>>, vector<1x32x128xf32>
    %377 = vector.shape_cast %376 : vector<1x32x128xf32> to vector<32x128xf32>
    %378 = arith.truncf %375 : vector<8x32xf32> to vector<8x32xbf16>
    %379 = arith.truncf %377 : vector<32x128xf32> to vector<32x128xbf16>
    %cst_135 = arith.constant dense<0.000000e+00> : vector<8x128xf32>
    %380 = tpu.matmul %378, %379, %cst_135 {dimension_numbers = #tpu.dot_dimension_numbers<[1], [0], [0], [1], [0, 0, 1, 1], [], []>} : vector<8x32xbf16>, vector<32x128xbf16>, vector<8x128xf32> -> vector<8x128xf32>
    %c1_136 = arith.constant 1 : index
    %c0_137 = arith.constant 0 : index
    %c0_138 = arith.constant 0 : index
    %381 = vector.load %arg10[%c1_136, %c0_137, %c0_138] : memref<2x1x128xf32, #tpu.memory_space<vmem>>, vector<1x1x128xf32>
    %382 = vector.shape_cast %381 : vector<1x1x128xf32> to vector<1x128xf32>
    %383 = vector.broadcast %382 : vector<1x128xf32> to vector<8x128xf32>
    %384 = arith.addf %380, %383 : vector<8x128xf32>
    %385 = arith.mulf %384, %384 : vector<8x128xf32>
    %386 = arith.mulf %384, %385 : vector<8x128xf32>
    %cst_139 = arith.constant 4.471500e-02 : f32
    %387 = vector.broadcast %cst_139 : f32 to vector<8x128xf32>
    %388 = arith.mulf %387, %386 : vector<8x128xf32>
    %389 = arith.addf %384, %388 : vector<8x128xf32>
    %cst_140 = arith.constant 0.797884583 : f32
    %390 = vector.broadcast %cst_140 : f32 to vector<8x128xf32>
    %391 = arith.mulf %390, %389 : vector<8x128xf32>
    %392 = math.tanh %391 : vector<8x128xf32>
    %cst_141 = arith.constant 1.000000e+00 : f32
    %393 = vector.broadcast %cst_141 : f32 to vector<8x128xf32>
    %394 = arith.addf %393, %392 : vector<8x128xf32>
    %cst_142 = arith.constant 5.000000e-01 : f32
    %395 = vector.broadcast %cst_142 : f32 to vector<8x128xf32>
    %396 = arith.mulf %395, %394 : vector<8x128xf32>
    %397 = arith.mulf %384, %396 : vector<8x128xf32>
    %c1_143 = arith.constant 1 : index
    %c0_144 = arith.constant 0 : index
    %c0_145 = arith.constant 0 : index
    %398 = vector.load %arg11[%c1_143, %c0_144, %c0_145] : memref<2x128x32xf32, #tpu.memory_space<vmem>>, vector<1x128x32xf32>
    %399 = vector.shape_cast %398 : vector<1x128x32xf32> to vector<128x32xf32>
    %400 = arith.truncf %397 : vector<8x128xf32> to vector<8x128xbf16>
    %401 = arith.truncf %399 : vector<128x32xf32> to vector<128x32xbf16>
    %cst_146 = arith.constant dense<0.000000e+00> : vector<8x32xf32>
    %402 = tpu.matmul %400, %401, %cst_146 {dimension_numbers = #tpu.dot_dimension_numbers<[1], [0], [0], [1], [0, 0, 1, 1], [], []>} : vector<8x128xbf16>, vector<128x32xbf16>, vector<8x32xf32> -> vector<8x32xf32>
    %c1_147 = arith.constant 1 : index
    %c0_148 = arith.constant 0 : index
    %c0_149 = arith.constant 0 : index
    %403 = vector.load %arg12[%c1_147, %c0_148, %c0_149] : memref<2x1x32xf32, #tpu.memory_space<vmem>>, vector<1x1x32xf32>
    %404 = vector.shape_cast %403 : vector<1x1x32xf32> to vector<1x32xf32>
    %405 = vector.broadcast %404 : vector<1x32xf32> to vector<8x32xf32>
    %406 = arith.addf %402, %405 : vector<8x32xf32>
    %407 = arith.addf %406, %375 : vector<8x32xf32>
    %c1_150 = arith.constant 1 : index
    %c0_151 = arith.constant 0 : index
    %c0_152 = arith.constant 0 : index
    %408 = vector.load %arg13[%c1_150, %c0_151, %c0_152] : memref<2x1x32xf32, #tpu.memory_space<vmem>>, vector<1x1x32xf32>
    %409 = vector.shape_cast %408 : vector<1x1x32xf32> to vector<1x32xf32>
    %c1_153 = arith.constant 1 : index
    %c0_154 = arith.constant 0 : index
    %c0_155 = arith.constant 0 : index
    %410 = vector.load %arg14[%c1_153, %c0_154, %c0_155] : memref<2x1x32xf32, #tpu.memory_space<vmem>>, vector<1x1x32xf32>
    %411 = vector.shape_cast %410 : vector<1x1x32xf32> to vector<1x32xf32>
    %cst_156 = arith.constant dense<0.000000e+00> : vector<8xf32>
    %412 = vector.multi_reduction <add>, %407, %cst_156 [1] : vector<8x32xf32> to vector<8xf32>
    %413 = vector.shape_cast %412 : vector<8xf32> to vector<8x1xf32>
    %cst_157 = arith.constant 3.200000e+01 : f32
    %414 = vector.broadcast %cst_157 : f32 to vector<8x1xf32>
    %415 = arith.divf %413, %414 : vector<8x1xf32>
    %416 = vector.broadcast %415 : vector<8x1xf32> to vector<8x32xf32>
    %417 = arith.subf %407, %416 : vector<8x32xf32>
    %418 = arith.mulf %417, %417 : vector<8x32xf32>
    %cst_158 = arith.constant dense<0.000000e+00> : vector<8xf32>
    %419 = vector.multi_reduction <add>, %418, %cst_158 [1] : vector<8x32xf32> to vector<8xf32>
    %420 = vector.shape_cast %419 : vector<8xf32> to vector<8x1xf32>
    %cst_159 = arith.constant 3.200000e+01 : f32
    %421 = vector.broadcast %cst_159 : f32 to vector<8x1xf32>
    %422 = arith.divf %420, %421 : vector<8x1xf32>
    %423 = vector.broadcast %415 : vector<8x1xf32> to vector<8x32xf32>
    %424 = arith.subf %407, %423 : vector<8x32xf32>
    %cst_160 = arith.constant 9.99999996E-13 : f32
    %425 = vector.broadcast %cst_160 : f32 to vector<8x1xf32>
    %426 = arith.addf %422, %425 : vector<8x1xf32>
    %427 = math.rsqrt %426 : vector<8x1xf32>
    %428 = vector.broadcast %427 : vector<8x1xf32> to vector<8x32xf32>
    %429 = arith.mulf %424, %428 : vector<8x32xf32>
    %430 = vector.broadcast %409 : vector<1x32xf32> to vector<8x32xf32>
    %431 = arith.mulf %429, %430 : vector<8x32xf32>
    %432 = vector.broadcast %411 : vector<1x32xf32> to vector<8x32xf32>
    %433 = arith.addf %431, %432 : vector<8x32xf32>
    %434 = vector.extract_strided_slice %433 {offsets = [0, 0], sizes = [1, 32], strides = [1, 1]} : vector<8x32xf32> to vector<1x32xf32>
    %c0_161 = arith.constant 0 : index
    %c0_162 = arith.constant 0 : index
    %435 = vector.load %arg15[%c0_161, %c0_162] : memref<32x32xf32, #tpu.memory_space<vmem>>, vector<32x32xf32>
    %436 = arith.truncf %434 : vector<1x32xf32> to vector<1x32xbf16>
    %437 = arith.truncf %435 : vector<32x32xf32> to vector<32x32xbf16>
    %cst_163 = arith.constant dense<0.000000e+00> : vector<1x32xf32>
    %438 = tpu.matmul %436, %437, %cst_163 {dimension_numbers = #tpu.dot_dimension_numbers<[1], [0], [0], [1], [0, 0, 1, 1], [], []>} : vector<1x32xbf16>, vector<32x32xbf16>, vector<1x32xf32> -> vector<1x32xf32>
    %c0_164 = arith.constant 0 : index
    %c0_165 = arith.constant 0 : index
    %439 = vector.load %arg16[%c0_164, %c0_165] : memref<1x32xf32, #tpu.memory_space<vmem>>, vector<1x32xf32>
    %440 = arith.addf %438, %439 : vector<1x32xf32>
    %441 = math.tanh %440 : vector<1x32xf32>
    %c0_166 = arith.constant 0 : index
    %c0_167 = arith.constant 0 : index
    %442 = vector.load %arg17[%c0_166, %c0_167] : memref<32x128xf32, #tpu.memory_space<vmem>>, vector<32x128xf32>
    %443 = arith.truncf %441 : vector<1x32xf32> to vector<1x32xbf16>
    %444 = arith.truncf %442 : vector<32x128xf32> to vector<32x128xbf16>
    %cst_168 = arith.constant dense<0.000000e+00> : vector<1x128xf32>
    %445 = tpu.matmul %443, %444, %cst_168 {dimension_numbers = #tpu.dot_dimension_numbers<[1], [0], [0], [1], [0, 0, 1, 1], [], []>} : vector<1x32xbf16>, vector<32x128xbf16>, vector<1x128xf32> -> vector<1x128xf32>
    %c0_169 = arith.constant 0 : index
    %c0_170 = arith.constant 0 : index
    %446 = vector.load %arg18[%c0_169, %c0_170] : memref<1x128xf32, #tpu.memory_space<vmem>>, vector<1x128xf32>
    %447 = arith.addf %445, %446 : vector<1x128xf32>
    %448 = tpu.iota {dimensions = array<i32: 1>} : vector<1x128xi32>
    %c3_i32 = arith.constant 3 : i32
    %449 = vector.broadcast %c3_i32 : i32 to vector<1x128xi32>
    %450 = arith.cmpi slt, %448, %449 : vector<1x128xi32>
    %cst_171 = arith.constant 0.000000e+00 : f32
    %451 = vector.broadcast %cst_171 : f32 to vector<1x128xf32>
    %452 = arith.select %450, %447, %451 : vector<1x128xi1>, vector<1x128xf32>
    %cst_172 = arith.constant dense<0.000000e+00> : vector<1xf32>
    %453 = vector.multi_reduction <add>, %452, %cst_172 [1] : vector<1x128xf32> to vector<1xf32>
    %454 = vector.shape_cast %453 : vector<1xf32> to vector<1x1xf32>
    %cst_173 = arith.constant 0.333333343 : f32
    %455 = vector.broadcast %cst_173 : f32 to vector<1x1xf32>
    %456 = arith.mulf %454, %455 : vector<1x1xf32>
    %457 = vector.broadcast %456 : vector<1x1xf32> to vector<1x128xf32>
    %458 = arith.subf %447, %457 : vector<1x128xf32>
    %cst_174 = arith.constant 0.000000e+00 : f32
    %459 = vector.broadcast %cst_174 : f32 to vector<1x128xf32>
    %460 = arith.select %450, %458, %459 : vector<1x128xi1>, vector<1x128xf32>
    %c0_175 = arith.constant 0 : index
    %c0_176 = arith.constant 0 : index
    %c0_177 = arith.constant 0 : index
    %461 = vector.load %arg19[%c0_175, %c0_176, %c0_177] : memref<1x1x128xf32, #tpu.memory_space<vmem>>, vector<1x1x128xf32>
    %462 = vector.shape_cast %461 : vector<1x1x128xf32> to vector<1x128xf32>
    %463 = vector.shape_cast %460 : vector<1x128xf32> to vector<1x1x128xf32>
    tpu.vector_store %arg19[%c0_175, %c0_176, %c0_177], %463 {strides = array<i32>} : memref<1x1x128xf32, #tpu.memory_space<vmem>>, vector<1x1x128xf32>,
    return
  }
  func.func @transform_0(%arg0: i32) -> (i32, i32, i32) {
    %c0_i32 = arith.constant 0 : i32
    %c0_i32_0 = arith.constant 0 : i32
    %c0_i32_1 = arith.constant 0 : i32
    return %arg0, %c0_i32, %c0_i32_0 : i32, i32, i32
  }
  func.func @transform_1(%arg0: i32) -> (i32, i32, i32) {
    %c0_i32 = arith.constant 0 : i32
    %c0_i32_0 = arith.constant 0 : i32
    %c0_i32_1 = arith.constant 0 : i32
    return %arg0, %c0_i32, %c0_i32_0 : i32, i32, i32
  }
  func.func @transform_2(%arg0: i32) -> (i32, i32, i32) {
    %c0_i32 = arith.constant 0 : i32
    %c0_i32_0 = arith.constant 0 : i32
    %c0_i32_1 = arith.constant 0 : i32
    %c0_i32_2 = arith.constant 0 : i32
    return %c0_i32, %c0_i32_0, %c0_i32_1 : i32, i32, i32
  }
  func.func @transform_3(%arg0: i32) -> (i32, i32, i32) {
    %c0_i32 = arith.constant 0 : i32
    %c0_i32_0 = arith.constant 0 : i32
    %c0_i32_1 = arith.constant 0 : i32
    %c0_i32_2 = arith.constant 0 : i32
    return %c0_i32, %c0_i32_0, %c0_i32_1 : i32, i32, i32
  }
  func.func @transform_4(%arg0: i32) -> (i32, i32, i32) {
    %c0_i32 = arith.constant 0 : i32
    %c0_i32_0 = arith.constant 0 : i32
    %c0_i32_1 = arith.constant 0 : i32
    %c0_i32_2 = arith.constant 0 : i32
    return %c0_i32, %c0_i32_0, %c0_i32_1 : i32, i32, i32
  }
  func.func @transform_5(%arg0: i32) -> (i32, i32, i32) {
    %c0_i32 = arith.constant 0 : i32
    %c0_i32_0 = arith.constant 0 : i32
    %c0_i32_1 = arith.constant 0 : i32
    %c0_i32_2 = arith.constant 0 : i32
    return %c0_i32, %c0_i32_0, %c0_i32_1 : i32, i32, i32
  }
  func.func @transform_6(%arg0: i32) -> (i32, i32, i32) {
    %c0_i32 = arith.constant 0 : i32
    %c0_i32_0 = arith.constant 0 : i32
    %c0_i32_1 = arith.constant 0 : i32
    %c0_i32_2 = arith.constant 0 : i32
    return %c0_i32, %c0_i32_0, %c0_i32_1 : i32, i32, i32
  }
  func.func @transform_7(%arg0: i32) -> (i32, i32, i32) {
    %c0_i32 = arith.constant 0 : i32
    %c0_i32_0 = arith.constant 0 : i32
    %c0_i32_1 = arith.constant 0 : i32
    %c0_i32_2 = arith.constant 0 : i32
    return %c0_i32, %c0_i32_0, %c0_i32_1 : i32, i32, i32
  }
  func.func @transform_8(%arg0: i32) -> (i32, i32, i32) {
    %c0_i32 = arith.constant 0 : i32
    %c0_i32_0 = arith.constant 0 : i32
    %c0_i32_1 = arith.constant 0 : i32
    %c0_i32_2 = arith.constant 0 : i32
    return %c0_i32, %c0_i32_0, %c0_i32_1 : i32, i32, i32
  }
  func.func @transform_9(%arg0: i32) -> (i32, i32, i32) {
    %c0_i32 = arith.constant 0 : i32
    %c0_i32_0 = arith.constant 0 : i32
    %c0_i32_1 = arith.constant 0 : i32
    %c0_i32_2 = arith.constant 0 : i32
    return %c0_i32, %c0_i32_0, %c0_i32_1 : i32, i32, i32
  }
  func.func @transform_10(%arg0: i32) -> (i32, i32, i32) {
    %c0_i32 = arith.constant 0 : i32
    %c0_i32_0 = arith.constant 0 : i32
    %c0_i32_1 = arith.constant 0 : i32
    %c0_i32_2 = arith.constant 0 : i32
    return %c0_i32, %c0_i32_0, %c0_i32_1 : i32, i32, i32
  }
  func.func @transform_11(%arg0: i32) -> (i32, i32, i32) {
    %c0_i32 = arith.constant 0 : i32
    %c0_i32_0 = arith.constant 0 : i32
    %c0_i32_1 = arith.constant 0 : i32
    %c0_i32_2 = arith.constant 0 : i32
    return %c0_i32, %c0_i32_0, %c0_i32_1 : i32, i32, i32
  }
  func.func @transform_12(%arg0: i32) -> (i32, i32, i32) {
    %c0_i32 = arith.constant 0 : i32
    %c0_i32_0 = arith.constant 0 : i32
    %c0_i32_1 = arith.constant 0 : i32
    %c0_i32_2 = arith.constant 0 : i32
    return %c0_i32, %c0_i32_0, %c0_i32_1 : i32, i32, i32
  }
  func.func @transform_13(%arg0: i32) -> (i32, i32, i32) {
    %c0_i32 = arith.constant 0 : i32
    %c0_i32_0 = arith.constant 0 : i32
    %c0_i32_1 = arith.constant 0 : i32
    %c0_i32_2 = arith.constant 0 : i32
    return %c0_i32, %c0_i32_0, %c0_i32_1 : i32, i32, i32
  }
  func.func @transform_14(%arg0: i32) -> (i32, i32) {
    %c0_i32 = arith.constant 0 : i32
    %c0_i32_0 = arith.constant 0 : i32
    %c0_i32_1 = arith.constant 0 : i32
    return %c0_i32, %c0_i32_0 : i32, i32
  }
  func.func @transform_15(%arg0: i32) -> (i32, i32) {
    %c0_i32 = arith.constant 0 : i32
    %c0_i32_0 = arith.constant 0 : i32
    %c0_i32_1 = arith.constant 0 : i32
    return %c0_i32, %c0_i32_0 : i32, i32
  }
  func.func @transform_16(%arg0: i32) -> (i32, i32) {
    %c0_i32 = arith.constant 0 : i32
    %c0_i32_0 = arith.constant 0 : i32
    %c0_i32_1 = arith.constant 0 : i32
    return %c0_i32, %c0_i32_0 : i32, i32
  }
  func.func @transform_17(%arg0: i32) -> (i32, i32) {
    %c0_i32 = arith.constant 0 : i32
    %c0_i32_0 = arith.constant 0 : i32
    %c0_i32_1 = arith.constant 0 : i32
    return %c0_i32, %c0_i32_0 : i32, i32
  }
  func.func @transform_18(%arg0: i32) -> (i32, i32, i32) {
    %c0_i32 = arith.constant 0 : i32
    %c0_i32_0 = arith.constant 0 : i32
    %c0_i32_1 = arith.constant 0 : i32
    return %arg0, %c0_i32, %c0_i32_0 : i32, i32, i32
  }
}

</mosaic_0001>

<bundles_post_ra>
// kernel: relative_bert_forward.1
= control target key start
LH: loop header
LB: loop body
LE: loop exit
PB: predicated region body
PF: predicated region fallthrough
CT: control target
= control target key end

     0   :  { %s3929_s0 = inlined_call_operand.vmem [shape: f32[2,8,32], index: 0, kind: input, shape index: {}]   ;;  %s3930_s1 = inlined_call_operand.vmem [shape: f32[2,1,8], index: 1, kind: input, shape index: {}]   ;;  %s3931_s2 = inlined_call_operand.vmem [shape: f32[2,32,96], index: 2, kind: input, shape index: {}]   ;;  %s3932_s3 = inlined_call_operand.vmem [shape: f32[2,1,96], index: 3, kind: input, shape index: {}]   ;;  %s3933_s4 = inlined_call_operand.vmem [shape: f32[2,32,32], index: 4, kind: input, shape index: {}]   ;;  %s3934_s5 = inlined_call_operand.vmem [shape: f32[2,1,32], index: 5, kind: input, shape index: {}]   ;;  %s3935_s6 = inlined_call_operand.vmem [shape: f32[2,1,32], index: 6, kind: input, shape index: {}]   ;;  %s3936_s7 = inlined_call_operand.vmem [shape: f32[2,1,32], index: 7, kind: input, shape index: {}]   ;;  %s3937_s8 = inlined_call_operand.vmem [shape: f32[2,32,128], index: 8, kind: input, shape index: {}]   ;;  %s3938_s9 = inlined_call_operand.vmem [shape: f32[2,1,128], index: 9, kind: input, shape index: {}]   ;;  %s3939_s10 = inlined_call_operand.vmem [shape: f32[2,128,32], index: 10, kind: input, shape index: {}]   ;;  %s3940_s11 = inlined_call_operand.vmem [shape: f32[2,1,32], index: 11, kind: input, shape index: {}]   ;;  %s3941_s12 = inlined_call_operand.vmem [shape: f32[2,1,32], index: 12, kind: input, shape index: {}]   ;;  %s3942_s13 = inlined_call_operand.vmem [shape: f32[2,1,32], index: 13, kind: input, shape index: {}]   ;;  %s3943_s14 = inlined_call_operand.vmem [shape: f32[32,32], index: 14, kind: input, shape index: {}]   ;;  %s3944_s15 = inlined_call_operand.vmem [shape: f32[1,32], index: 15, kind: input, shape index: {}]   ;;  %s3945_s16 = inlined_call_operand.vmem [shape: f32[32,128], index: 16, kind: input, shape index: {}]   ;;  %s3946_s17 = inlined_call_operand.vmem [shape: f32[1,128], index: 17, kind: input, shape index: {}]   ;;  %s3947_s18 = inlined_call_operand.hbm [shape: f32[2,1,128], index: 18, kind: output, shape index: {}]  }
   0x1   :  { %3964 = sst [smem:[#allocation9_spill]] %s3929_s0 }
   0x2   :  { %3965 = sst [smem:[#allocation10_spill]] %s3930_s1 }
   0x3   :  { %3966 = sst [smem:[#allocation11_spill]] %s3931_s2 }
   0x4   :  { %3967 = sst [smem:[#allocation12_spill]] %s3932_s3 }
   0x5   :  { %3968 = sst [smem:[#allocation13_spill]] %s3933_s4 }
   0x6   :  { %23 = vsyncpa [#allocation3], 0 }
   0x7   :  { %25 = vsyncpa [#allocation3 + $0x1], 0  ;;  %s3296_s27 = smov 0   ;;  %s3298_s28 = smov 0  }
   0x8   :  { %s3300_s29 = smov 0   ;;  %s3302_s30 = smov 0  }
   0x9 LB: > { %3969 = sst [smem:[#allocation5_spill]] %s3181_s29  ;;  %s3317_s0 = sadd.s32 4294967295, %s3185_s30   ;;  %s3185_s30 = sphi %s3302_s30, %s3992_s30   ;;  %s3181_s29 = sphi %s3300_s29, %s3994_s29   ;;  %s3177_s28 = sphi %s3298_s28, %s3996_s28   ;;  %s3173_s27 = sphi %s3296_s27, %s3995_s27  }
   0xa   : > { %s2621_s19 = sadd.s32 4294967294, %s3185_s30   ;;  %s3321_s1 = sadd.s32 1, %s3185_s30  }
   0xb   : > { %3970 = sst [smem:[#allocation6_spill]] %s3321_s1  ;;  %s426_s20 = sadd.s32 1, %s3181_s29 }
   0xc   : > { %s423_s21 = ssub.s32 %s3185_s30, %s3321_s1  ;;  %p436_p0 = scmp.ne.s32.totalorder %s3181_s29, %s3177_s28 }
   0xd   : > { %p424_p1 = scmp.eq.s32.totalorder %s423_s21, 0  ;;  %p437_p2 = scmp.eq.s32.totalorder %s3317_s0, 1 }
   0xe   : > { %p442_p3 = scmp.ne.s32.totalorder %s3177_s28, %s3173_s27  ;;  %p443_p4 = scmp.eq.s32.totalorder %s2621_s19, 1 }
   0xf   : > { %s3332_s22 = scalar_select %p424_p1, %s3181_s29, %s426_s20  }
  0x10   : > { %p3334_p5 = por %p437_p2, %p436_p0  ;;  %p3338_p6 = por %p443_p4, %p442_p3 }
  0x11   : > { %3971 = sst [smem:[#allocation7_spill]] %s3332_s22  ;;  %p2624_p7 = scmp.ge.s32.totalorder %s3185_s30, 1 }
  0x12   : > { %s3973_s23 = scalar_select %p3338_p6, 1, 0 }
  0x13   : > { %p522_p8 = scmp.lt.s32.totalorder %s3185_s30, 3 }
  0x14   : > { %3974 = sst [smem:[#allocation8_spill]] %s3973_s23 }
  0x15   : > { %p523_p9 = pnand %p2624_p7, %p522_p8 }
  0x16   : > { %s3975_s26 = sld [smem:[#allocation11_spill]] (!%p523_p9)  ;;  %p577_p10 = scmp.lt.s32.totalorder (!%p523_p9), %s3317_s0, 1 }
  0x17   : > { %526 = sbr.rel (%p523_p9) target bundleno = 8133 (0x1fc5), region = 92  ;;  %s3976_s1 = sld [smem:[#allocation9_spill]] (!%p523_p9) }
  0x18   : > { %s3977_s3 = sld [smem:[#allocation12_spill]] (!%p523_p9)  ;;  %s3962_s25 = smov (!%p523_p9), 96  }
  0x19   : > { %s3959_s29 = smov (!%p523_p9), 88   ;;  %s3978_s20 = sld [smem:[#allocation10_spill]] (!%p523_p9) }
  0x1a   : > { %s3979_s4 = sld [smem:[#allocation13_spill]] (!%p523_p9)  ;;  %s3981_s23 = smov (!%p523_p9), 64  }
  0x1c   : > { %v591_v0 = vld [vmem:[%s3975_s26 + $0x10] sm:$0xff]  ;;  %v592_v1 = vld [vmem:[%s3975_s26 + $0x18] sm:$0xff]  ;;  %v589_v2 = vld [vmem:[%s3975_s26] sm:$0xff]  ;;  %v3187_v3 = vmov 0.0   ;;  %vm3188_vm0 = vmmov 0   ;;  %s3361_s24 = scalar_select %p577_p10, %s3317_s0, 1  ;;  %v704_v21 = vlaneseq }
  0x1d   : > { %2795 = vmatprep.subr.bf16.mxu1 %v3187_v3  ;;  %v595_v4 = vpack.c.bf16 %v592_v1, %v591_v0  ;;  %v590_v5 = vld [vmem:[%s3975_s26 + $0x8] sm:$0xff]  ;;  %2799 = vmatprep.mubr.msk.bf16.mxu1 %vm3188_vm0, %v3187_v3  ;;  %vm603_vm1 = vcmask 261120   ;;  %vm655_vm2 = vcmask 64512   ;;  %vm727_vm3 = vcmask 1043456  }
  0x1e   : > { %2809 = vmatprep.subr.bf16.mxu0 %v3187_v3  ;;  %2811 = vmatprep.mubr.msk.bf16.mxu0 %vm3188_vm0, %v3187_v3  ;;  %v594_v6 = vpack.c.bf16 %v590_v5, %v589_v2  ;;  %s2625_s22 = sshll.u32 %s3361_s24, 3  ;;  %v2626_v9 = vld [vmem:[%s3977_s3] ss:$0 sm:$0xff]  ;;  %v705_v24 = vshrl.u32 %v704_v21, 7  ;;  %vm2536_vm5 = vcmask 1040384  }
  0x1f   : > { %2796 = vmatpush3.bf16.msra.mxu1 %v595_v4  ;;  %s580_s19 = scalar_lea.vmem %s3976_s1, %s2625_s22  ;;  %s3960_s22 = smov 120  }
  0x20   : > { %2797 = vmatprep.subr.bf16.mxu1 %v3187_v3  ;;  %v3371_v7 = vld [vmem:[%s580_s19] sm:$0xff]  ;;  %s583_s21 = scalar_lea.vmem %s3978_s20, %s3361_s24  ;;  %v706_v26 = vsub.s32 0, %v705_v24  ;;  %s3961_s24 = smov 64   ;;  %v648_v4 = vld [vmem:[%s3979_s4 + $0x8] sm:$0xff] }
  0x21   : > { %v593_v8 = vpack.c.bf16 %v3371_v7, %v3371_v7  ;;  %v586_v22 = vld [vmem:[%s583_s21] sm:$0x1]  ;;  %s3954_s1 = smov 56   ;;  %s3953_s19 = smov 112   ;;  %v886_v5 = vpack.c.bf16 %v648_v4, %v648_v4 }
  0x22   : > { %v587_v23 = vsub.f32 1.0, %v586_v22  ;;  %s3952_s20 = smov 80   ;;  %v647_v0 = vld [vmem:[%s3979_s4] sm:$0xff]  ;;  %s3986_s21 = smov 80  }
  0x23   : > { %2798 = vmatpush3.bf16.msra.mxu1 %v594_v6  ;;  %v772_v1 = vpack.c.bf16 %v647_v0, %v647_v0  ;;  %v891_v6 = vsel %vm727_vm3, %v886_v5, 0 }
  0x24   : > { %2803 = vmatprep.subr.bf16.mxu1 %v3187_v3  ;;  %v588_v25 = vmul.f32 -1e+09, %v587_v23 }
  0x25   : > { %v937_v2 = vsel %vm727_vm3, %v772_v1, 0 }
  0x26   : > { %2800 = vmatmul.mubr.msk.bf16.vlgmr.msra.gmra.mxu1 %vm603_vm1, %v593_v8  ;;  %v3406_v27 = vrot.slane %v588_v25, %v706_v26 }
  0x27   : > { %2805 = vmatprep.mubr.msk.bf16.mxu1 %vm3188_vm0, %v3187_v3 }
  0xe6   : > { %v641_v10 = vpop.f32.mrf.mxu1 }
  0xe7   : > { %v642_v11 = vadd.f32 %v2626_v9, %v641_v10 }
  0xe8   : > { %v2801_v12 = vpop.f32.mrf.mxu1 }
  0xe9   : > { %v3382_v13 = vpack.c.bf16 %v642_v11, %v642_v11 }
  0xea   : > { %v644_v14 = vpop.f32.mrf.mxu1 }
  0xeb   : > { %773 = vrot.lane.b32.xlu1 %v3382_v13, %s3960_s22  ;;  %653 = vrot.lane.b32.xlu0 %v3382_v13, %s3962_s25  ;;  %s3980_s22 = smov 96   ;;  %s3982_s25 = smov 120  }
  0xec   : > { %v2802_v15 = vpop.f32.mrf.mxu1 }
  0xef   : > { %775 = vrot.lane.b32.xlu0 %v3382_v13, %s3959_s29  ;;  %s3983_s29 = smov 88  }
 0x15d   : > { %v654_v16 = vpop.permute.xlu0 %653  ;;  %v774_v20 = vpop.permute.xlu1 %773 }
 0x15e   : > { %v660_v17 = vsel %vm655_vm2, %v654_v16, 0 }
 0x15f   : > { %2804 = vmatpush3.bf16.xpose.msra.mxu1 %v660_v17 }
 0x160   : > { %2815 = vmatprep.subr.bf16.mxu1 %v3187_v3 }
 0x161   : > { %v776_v18 = vpop.permute.xlu0 %775 }
 0x162   : > { %v781_v19 = vsel %vm655_vm2, %v776_v18, 0 }
 0x166   : > { %2806 = vmatmul.mubr.msk.bf16.vlgmr.msra.gmra.mxu1 %vm655_vm2, %v3382_v13 }
 0x167   : > { %2816 = vmatpush3.bf16.xpose.msra.mxu1 %v781_v19  ;;  %2817 = vmatprep.mubr.msk.bf16.mxu1 %vm3188_vm0, %v3187_v3 }
 0x168   : > { %2827 = vmatprep.subr.bf16.mxu1 %v3187_v3 }
 0x16e   : > { %2818 = vmatmul.mubr.msk.bf16.vlgmr.msra.gmra.mxu1 %vm655_vm2, %v774_v20 }
 0x16f   : > { %2829 = vmatprep.mubr.msk.bf16.mxu1 %vm3188_vm0, %v3187_v3  ;;  %2828 = vmatpush3.bf16.msra.mxu1 %v891_v6 }
 0x170   : > { %2839 = vmatprep.subr.bf16.mxu1 %v3187_v3 }
 0x226   : > { %v696_v28 = vpop.f32.mrf.mxu1 }
 0x227   : > { %v702_v29 = vmul.f32 0.35355338, %v696_v28 }
 0x228   : > { %v2807_v30 = vpop.f32.mrf.mxu1 }
 0x229   : > { %v709_v31 = vadd.f32 %v3406_v27, %v702_v29 }
 0x22a   : > { %v699_v32 = vpop.f32.mrf.mxu1 }
 0x22b   : > { %v710_v33 = vsel %vm655_vm2, %v709_v31, -inf }
 0x22c   : > { %711 = vmax.xlane.f32.xlu1 %v710_v33  ;;  %v2808_v34 = vpop.f32.mrf.mxu1 }
 0x22e   : > { %v817_v35 = vpop.f32.mrf.mxu1 }
 0x22f   : > { %v823_v36 = vmul.f32 0.35355338, %v817_v35 }
 0x230   : > { %v2819_v37 = vpop.f32.mrf.mxu1 }
 0x231   : > { %v824_v38 = vadd.f32 %v823_v36, %v3406_v27 }
 0x232   : > { %v820_v39 = vpop.f32.mrf.mxu1 }
 0x233   : > { %v825_v40 = vsel %vm655_vm2, %v824_v38, -inf }
 0x234   : > { %826 = vmax.xlane.f32.xlu0 %v825_v40  ;;  %v2820_v41 = vpop.f32.mrf.mxu1 }
 0x2b5   : > { %v712_v42 = vpop.xlane.xlu1 %711 }
 0x2b6   : > { %v713_v43 = vsub.f32 %v709_v31, %v712_v42 }
 0x2b8   : > { %v714_v44 = vmul.f32 1.442695, %v713_v43 }
 0x2ba   : > { %3079 = vpow2.f32 %v714_v44 }
 0x2bd   : > { %v827_v45 = vpop.xlane.xlu0 %826 }
 0x2be   : > { %v828_v46 = vsub.f32 %v824_v38, %v827_v45 }
 0x2c0   : > { %v829_v47 = vmul.f32 1.442695, %v828_v46 }
 0x2c2   : > { %3081 = vpow2.f32 %v829_v47 }
 0x2c7   : > { %v3080_v48 = vpop.eup %3079 }
 0x2c8   : > { %v716_v49 = vsel %vm655_vm2, %v3080_v48, 0.0 }
 0x2c9   : > { %717 = vadd.xlane.f32.xlu0 %v716_v49 }
 0x2cf   : > { %v3082_v50 = vpop.eup %3081 }
 0x2d0   : > { %v831_v51 = vsel %vm655_vm2, %v3082_v50, 0.0 }
 0x2d1   : > { %832 = vadd.xlane.f32.xlu1 %v831_v51 }
 0x2df   : > { %722 = vrot.lane.b32.xlu0 %v3382_v13, %s3961_s24  ;;  %s3984_s24 = smov 56  }
 0x2e2   : > { %837 = vrot.lane.b32.xlu1 %v3382_v13, %s3954_s1  ;;  %s3955_s1 = smov 72  }
 0x2e3   : > { %979 = vrot.lane.b32.xlu0 %v3382_v13, %s3953_s19  ;;  %s3957_s19 = smov 104  }
 0x2e6   : > { %981 = vrot.lane.b32.xlu1 %v3382_v13, %s3952_s20  ;;  %s3958_s20 = smov 48  }
 0x352   : > { %v718_v52 = vpop.xlane.xlu0 %717 }
 0x353   : > { %3083 = vrcp.f32 %v718_v52 }
 0x356   : > { %v723_v53 = vpop.permute.xlu0 %722 }
 0x357   : > { %v729_v54 = vsel %vm727_vm3, %v723_v53, 0 }
 0x358   : > { %2810 = vmatpush3.bf16.msra.mxu0 %v729_v54  ;;  %v649_v54 = vld [vmem:[%s3979_s4 + $0x10] sm:$0xff] }
 0x359   : > { %2821 = vmatprep.subr.bf16.mxu0 %v3187_v3 }
 0x35a   : > { %v833_v55 = vpop.xlane.xlu1 %832  ;;  %v980_v22 = vpop.permute.xlu0 %979 }
 0x35b   : > { %3085 = vrcp.f32 %v833_v55  ;;  %v1092_v55 = vpack.c.bf16 %v649_v54, %v649_v54 }
 0x35e   : > { %v838_v58 = vpop.permute.xlu1 %837 }
 0x35f   : > { %v843_v60 = vsel %vm727_vm3, %v838_v58, 0 }
 0x360   : > { %v3084_v56 = vpop.eup %3083 }
 0x361   : > { %v720_v57 = vmul.f32 %v3084_v56, %v3080_v48  ;;  %v1097_v56 = vsel %vm727_vm3, %v1092_v55, 0 }
 0x362   : > { %v982_v14 = vpop.permute.xlu1 %981 }
 0x363   : > { %v721_v59 = vpack.c.bf16 %v720_v57, %v720_v57  ;;  %v987_v18 = vsel %vm655_vm2, %v982_v14, 0 }
 0x365   : > { %2812 = vmatmul.mubr.msk.bf16.vlgmr.msra.gmra.mxu0 %vm655_vm2, %v721_v59 }
 0x366   : > { %2822 = vmatpush3.bf16.msra.mxu0 %v843_v60  ;;  %2823 = vmatprep.mubr.msk.bf16.mxu0 %vm3188_vm0, %v3187_v3 }
 0x367   : > { %2833 = vmatprep.subr.bf16.mxu0 %v3187_v3 }
 0x368   : > { %v3086_v61 = vpop.eup %3085 }
 0x369   : > { %v835_v62 = vmul.f32 %v3086_v61, %v3082_v50 }
 0x36b   : > { %v836_v63 = vpack.c.bf16 %v835_v62, %v835_v62 }
 0x36d   : > { %2824 = vmatmul.mubr.msk.bf16.vlgmr.msra.gmra.mxu0 %vm655_vm2, %v836_v63 }
 0x36e   : > { %2835 = vmatprep.mubr.msk.bf16.mxu0 %vm3188_vm0, %v3187_v3  ;;  %2834 = vmatpush3.bf16.msra.mxu0 %v937_v2 }
 0x36f   : > { %2845 = vmatprep.subr.bf16.mxu0 %v3187_v3 }
 0x425   : > { %v765_v8 = vpop.f32.mrf.mxu0 }
 0x426   : > { %v771_v9 = vpack.c.bf16 %v765_v8, %v765_v8 }
 0x427   : > { %v2813_v10 = vpop.f32.mrf.mxu0 }
 0x428   : > { %2836 = vmatmul.mubr.msk.bf16.vlgmr.msra.gmra.mxu0 %vm655_vm2, %v771_v9 }
 0x429   : > { %v768_v11 = vpop.f32.mrf.mxu0  ;;  %2847 = vmatprep.mubr.msk.bf16.mxu0 %vm3188_vm0, %v3187_v3 }
 0x42b   : > { %v2814_v12 = vpop.f32.mrf.mxu0 }
 0x42d   : > { %v879_v15 = vpop.f32.mrf.mxu0 }
 0x42e   : > { %v885_v16 = vpack.c.bf16 %v879_v15, %v879_v15 }
 0x42f   : > { %v2825_v17 = vpop.f32.mrf.mxu0 }
 0x430   : > { %2830 = vmatmul.mubr.msk.bf16.vlgmr.msra.gmra.mxu1 %vm655_vm2, %v885_v16 }
 0x431   : > { %2840 = vmatpush3.bf16.xpose.msra.mxu1 %v987_v18  ;;  %v882_v19 = vpop.f32.mrf.mxu0  ;;  %2841 = vmatprep.mubr.msk.bf16.mxu1 %vm3188_vm0, %v3187_v3 }
 0x432   : > { %2851 = vmatprep.subr.bf16.mxu1 %v3187_v3 }
 0x433   : > { %v2826_v20 = vpop.f32.mrf.mxu0 }
 0x438   : > { %2842 = vmatmul.mubr.msk.bf16.vlgmr.msra.gmra.mxu1 %vm655_vm2, %v980_v22 }
 0x439   : > { %2853 = vmatprep.mubr.msk.bf16.mxu1 %vm3188_vm0, %v3187_v3  ;;  %2852 = vmatpush3.bf16.msra.mxu1 %v1097_v56  ;;  %v2641_v56 = vld [vmem:[%s3935_s6] ss:$0 sm:$0xff] }
 0x43a   : > { %2863 = vmatprep.subr.bf16.mxu1 %v3187_v3 }
 0x4e8   : > { %v973_v23 = vpop.f32.mrf.mxu0 }
 0x4ea   : > { %v2837_v24 = vpop.f32.mrf.mxu0 }
 0x4ec   : > { %v976_v25 = vpop.f32.mrf.mxu0 }
 0x4ee   : > { %v2838_v26 = vpop.f32.mrf.mxu0 }
 0x4f0   : > { %v927_v28 = vpop.f32.mrf.mxu1 }
 0x4f1   : > { %v3453_v29 = vadd.f32 %v973_v23, %v927_v28 }
 0x4f2   : > { %v2831_v30 = vpop.f32.mrf.mxu1 }
 0x4f4   : > { %v930_v31 = vpop.f32.mrf.mxu1 }
 0x4f6   : > { %v2832_v32 = vpop.f32.mrf.mxu1 }
 0x4f8   : > { %v1023_v33 = vpop.f32.mrf.mxu1 }
 0x4f9   : > { %v1029_v34 = vmul.f32 0.35355338, %v1023_v33 }
 0x4fa   : > { %v2843_v35 = vpop.f32.mrf.mxu1 }
 0x4fb   : > { %v1030_v36 = vadd.f32 %v1029_v34, %v3406_v27  ;;  %v2640_v34 = vld [vmem:[%s3934_s5] ss:$0 sm:$0xff] }
 0x4fc   : > { %v1026_v37 = vpop.f32.mrf.mxu1 }
 0x4fd   : > { %v1031_v38 = vsel %vm655_vm2, %v1030_v36, -inf }
 0x4fe   : > { %1032 = vmax.xlane.f32.xlu1 %v1031_v38  ;;  %v2844_v39 = vpop.f32.mrf.mxu1 }
 0x50f   : > { %1142 = vrot.lane.b32.xlu1 %v3382_v13, %s3955_s1  ;;  %s3956_s1 = smov 40  }
 0x513   : > { %1140 = vrot.lane.b32.xlu1 %v3382_v13, %s3957_s19  ;;  %s3990_s19 = smov 40  }
 0x587   : > { %v1033_v40 = vpop.xlane.xlu1 %1032 }
 0x588   : > { %v1034_v41 = vsub.f32 %v1030_v36, %v1033_v40 }
 0x58a   : > { %v1035_v42 = vmul.f32 1.442695, %v1034_v41 }
 0x58b   : > { %v1143_v50 = vpop.permute.xlu1 %1142 }
 0x58c   : > { %3087 = vpow2.f32 %v1035_v42  ;;  %v1148_v52 = vsel %vm655_vm2, %v1143_v50, 0  ;;  %v1341_v50 = vld [vmem:[%s3937_s8 + $0x8] sm:$0xff] }
 0x58f   : > { %v1141_v53 = vpop.permute.xlu1 %1140 }
 0x599   : > { %v3088_v43 = vpop.eup %3087 }
 0x59a   : > { %v1037_v44 = vsel %vm655_vm2, %v3088_v43, 0.0 }
 0x59b   : > { %1038 = vadd.xlane.f32.xlu0 %v1037_v44 }
 0x5b1   : > { %1043 = vrot.lane.b32.xlu0 %v3382_v13, %s3958_s20 }
 0x624   : > { %v1039_v45 = vpop.xlane.xlu0 %1038 }
 0x625   : > { %3089 = vrcp.f32 %v1039_v45 }
 0x628   : > { %v1044_v46 = vpop.permute.xlu0 %1043 }
 0x629   : > { %v1049_v47 = vsel %vm727_vm3, %v1044_v46, 0 }
 0x62a   : > { %2846 = vmatpush3.bf16.msra.mxu0 %v1049_v47  ;;  %v1342_v47 = vld [vmem:[%s3937_s8 + $0x10] sm:$0xff] }
 0x62b   : > { %2857 = vmatprep.subr.bf16.mxu0 %v3187_v3 }
 0x632   : > { %v3090_v48 = vpop.eup %3089 }
 0x633   : > { %v1041_v49 = vmul.f32 %v3090_v48, %v3088_v43  ;;  %v1343_v48 = vld [vmem:[%s3937_s8 + $0x18] sm:$0xff] }
 0x635   : > { %v1042_v51 = vpack.c.bf16 %v1041_v49, %v1041_v49  ;;  %v1340_v49 = vld [vmem:[%s3937_s8] sm:$0xff] }
 0x637   : > { %2848 = vmatmul.mubr.msk.bf16.vlgmr.msra.gmra.mxu0 %vm655_vm2, %v1042_v51  ;;  %v1345_v51 = vpack.c.bf16 %v1341_v50, %v1340_v49 }
 0x638   : > { %2858 = vmatpush3.bf16.xpose.msra.mxu0 %v1148_v52  ;;  %2859 = vmatprep.mubr.msk.bf16.mxu0 %vm3188_vm0, %v3187_v3 }
 0x639   : > { %2869 = vmatprep.subr.bf16.mxu0 %v3187_v3 }
 0x63f   : > { %2860 = vmatmul.mubr.msk.bf16.vlgmr.msra.gmra.mxu0 %vm655_vm2, %v1141_v53 }
 0x640   : > { %2871 = vmatprep.mubr.msk.bf16.mxu0 %vm3188_vm0, %v3187_v3 }
 0x6f7   : > { %v1085_v57 = vpop.f32.mrf.mxu0 }
 0x6f8   : > { %v1091_v58 = vpack.c.bf16 %v1085_v57, %v1085_v57 }
 0x6f9   : > { %v2849_v59 = vpop.f32.mrf.mxu0 }
 0x6fa   : > { %2854 = vmatmul.mubr.msk.bf16.vlgmr.msra.gmra.mxu1 %vm655_vm2, %v1091_v58  ;;  %v2642_v58 = vld [vmem:[%s3936_s7] ss:$0 sm:$0xff] }
 0x6fb   : > { %v1088_v60 = vpop.f32.mrf.mxu0  ;;  %2865 = vmatprep.mubr.msk.bf16.mxu1 %vm3188_vm0, %v3187_v3 }
 0x6fd   : > { %v2850_v61 = vpop.f32.mrf.mxu0 }
 0x6ff   : > { %v1184_v62 = vpop.f32.mrf.mxu0 }
 0x700   : > { %v1190_v63 = vmul.f32 0.35355338, %v1184_v62  ;;  %v1420_v62 = vld [vmem:[%s3939_s10 + $0x70] sm:$0xff] }
 0x701   : > { %v2861_v0 = vpop.f32.mrf.mxu0 }
 0x702   : > { %v1191_v1 = vadd.f32 %v1190_v63, %v3406_v27  ;;  %v1421_v63 = vld [vmem:[%s3939_s10 + $0x78] sm:$0xff] }
 0x703   : > { %v1187_v2 = vpop.f32.mrf.mxu0  ;;  %v1430_v0 = vpack.c.bf16 %v1421_v63, %v1420_v62 }
 0x704   : > { %v1192_v4 = vsel %vm655_vm2, %v1191_v1, -inf  ;;  %v1419_v2 = vld [vmem:[%s3939_s10 + $0x68] sm:$0xff] }
 0x705   : > { %1193 = vmax.xlane.f32.xlu0 %v1192_v4  ;;  %v2862_v5 = vpop.f32.mrf.mxu0 }
 0x706   : > { %v1416_v5 = vld [vmem:[%s3939_s10 + $0x50] sm:$0xff] }
 0x71b   : > { %1204 = vrot.lane.b32.xlu0 %v3382_v13, %s3956_s1  ;;  %v650_v13 = vld [vmem:[%s3979_s4 + $0x18] sm:$0xff]  ;;  %s3985_s1 = smov 112  }
 0x71c   : > { %v1253_v19 = vpack.c.bf16 %v650_v13, %v650_v13  ;;  %v1408_v13 = vld [vmem:[%s3939_s10 + $0x10] sm:$0xff] }
 0x71e   : > { %v1258_v22 = vsel %vm727_vm3, %v1253_v19, 0  ;;  %v1409_v19 = vld [vmem:[%s3939_s10 + $0x18] sm:$0xff] }
 0x71f   : > { %2870 = vmatpush3.bf16.msra.mxu0 %v1258_v22  ;;  %v1406_v22 = vld [vmem:[%s3939_s10] sm:$0xff] }
 0x720   : > { %2883 = vmatprep.subr.bf16.mxu0 %v3187_v3 }
 0x78e   : > { %v1194_v6 = vpop.xlane.xlu0 %1193 }
 0x78f   : > { %v1195_v8 = vsub.f32 %v1191_v1, %v1194_v6  ;;  %v1418_v1 = vld [vmem:[%s3939_s10 + $0x60] sm:$0xff]  ;;  %v1417_v6 = vld [vmem:[%s3939_s10 + $0x58] sm:$0xff] }
 0x790   : > { %v1429_v4 = vpack.c.bf16 %v1419_v2, %v1418_v1  ;;  %v2647_v2 = vld [vmem:[%s3942_s13] ss:$0 sm:$0xff] }
 0x791   : > { %v1196_v9 = vmul.f32 1.442695, %v1195_v8  ;;  %v1428_v8 = vpack.c.bf16 %v1417_v6, %v1416_v5 }
 0x792   : > { %v1205_v10 = vpop.permute.xlu0 %1204 }
 0x793   : > { %3091 = vpow2.f32 %v1196_v9  ;;  %v1210_v11 = vsel %vm727_vm3, %v1205_v10, 0  ;;  %v1414_v9 = vld [vmem:[%s3939_s10 + $0x40] sm:$0xff]  ;;  %v1415_v10 = vld [vmem:[%s3939_s10 + $0x48] sm:$0xff] }
 0x794   : > { %2864 = vmatpush3.bf16.msra.mxu1 %v1210_v11  ;;  %v1427_v11 = vpack.c.bf16 %v1415_v10, %v1414_v9 }
 0x795   : > { %2875 = vmatprep.subr.bf16.mxu1 %v3187_v3 }
 0x7a0   : > { %v3092_v12 = vpop.eup %3091 }
 0x7a1   : > { %v1198_v14 = vsel %vm655_vm2, %v3092_v12, 0.0 }
 0x7a2   : > { %1199 = vadd.xlane.f32.xlu1 %v1198_v14  ;;  %v1413_v14 = vld [vmem:[%s3939_s10 + $0x38] sm:$0xff] }
 0x7ba   : > { %v1133_v15 = vpop.f32.mrf.mxu1 }
 0x7bb   : > { %v1139_v16 = vadd.f32 %v1133_v15, %v3453_v29 }
 0x7bc   : > { %v2855_v17 = vpop.f32.mrf.mxu1 }
 0x7bd   : > { %v1411_v17 = vld [vmem:[%s3939_s10 + $0x28] sm:$0xff] }
 0x7be   : > { %v1136_v18 = vpop.f32.mrf.mxu1 }
 0x7c0   : > { %v2856_v20 = vpop.f32.mrf.mxu1 }
 0x7c1   : > { %v1424_v20 = vpack.c.bf16 %v1409_v19, %v1408_v13 }
 0x82b   : > { %v1200_v23 = vpop.xlane.xlu1 %1199 }
 0x82c   : > { %3093 = vrcp.f32 %v1200_v23  ;;  %v1407_v23 = vld [vmem:[%s3939_s10 + $0x8] sm:$0xff] }
 0x839   : > { %v3094_v24 = vpop.eup %3093 }
 0x83a   : > { %v1202_v25 = vmul.f32 %v3094_v24, %v3092_v12  ;;  %v1412_v12 = vld [vmem:[%s3939_s10 + $0x30] sm:$0xff]  ;;  %v1423_v24 = vpack.c.bf16 %v1407_v23, %v1406_v22 }
 0x83b   : > { %v1426_v15 = vpack.c.bf16 %v1413_v14, %v1412_v12 }
 0x83c   : > { %v1203_v26 = vpack.c.bf16 %v1202_v25, %v1202_v25  ;;  %v2643_v25 = vld [vmem:[%s3938_s9] ss:$0 sm:$0xff] }
 0x83e   : > { %2866 = vmatmul.mubr.msk.bf16.vlgmr.msra.gmra.mxu1 %vm655_vm2, %v1203_v26 }
 0x83f   : > { %2879 = vmatprep.mubr.msk.bf16.mxu1 %vm3188_vm0, %v3187_v3 }
 0x8fe   : > { %v1246_v28 = vpop.f32.mrf.mxu1 }
 0x8ff   : > { %v1252_v29 = vpack.c.bf16 %v1246_v28, %v1246_v28 }
 0x900   : > { %v2867_v30 = vpop.f32.mrf.mxu1 }
 0x901   : > { %2872 = vmatmul.mubr.msk.bf16.vlgmr.msra.gmra.mxu0 %vm655_vm2, %v1252_v29 }
 0x902   : > { %v1249_v31 = vpop.f32.mrf.mxu1  ;;  %2899 = vmatprep.mubr.msk.bf16.mxu0 %vm3188_vm0, %v3187_v3  ;;  %2884 = vmatpush3.bf16.msra.mxu0 %v1430_v0  ;;  %v2646_v0 = vld [vmem:[%s3941_s12] ss:$0 sm:$0xff] }
 0x903   : > { %2885 = vmatprep.subr.bf16.mxu0 %v3187_v3 }
 0x904   : > { %v2868_v32 = vpop.f32.mrf.mxu1 }
 0x906   : > { %2886 = vmatpush3.bf16.msra.mxu0 %v1429_v4 }
 0x907   : > { %2887 = vmatprep.subr.bf16.mxu0 %v3187_v3 }
 0x90a   : > { %2888 = vmatpush3.bf16.msra.mxu0 %v1428_v8  ;;  %v2653_v8 = vld [vmem:[%s3977_s3 + $0x1] ss:$0 sm:$0xff]  ;;  %s3200_s3 = smov [#allocation2]  }
 0x90b   : > { %2889 = vmatprep.subr.bf16.mxu0 %v3187_v3 }
 0x90e   : > { %2890 = vmatpush3.bf16.msra.mxu0 %v1427_v11 }
 0x90f   : > { %2891 = vmatprep.subr.bf16.mxu0 %v3187_v3 }
 0x912   : > { %2892 = vmatpush3.bf16.msra.mxu0 %v1426_v15 }
 0x913   : > { %2893 = vmatprep.subr.bf16.mxu0 %v3187_v3 }
 0x9c1   : > { %v1294_v33 = vpop.f32.mrf.mxu0 }
 0x9c2   : > { %v1300_v35 = vadd.f32 %v1294_v33, %v1139_v16  ;;  %v1410_v16 = vld [vmem:[%s3939_s10 + $0x20] sm:$0xff] }
 0x9c3   : > { %v2873_v36 = vpop.f32.mrf.mxu0  ;;  %v1425_v18 = vpack.c.bf16 %v1411_v17, %v1410_v16 }
 0x9c4   : > { %v1308_v37 = vadd.f32 %v2640_v34, %v1300_v35 }
 0x9c5   : > { %v1297_v38 = vpop.f32.mrf.mxu0  ;;  %2894 = vmatpush3.bf16.msra.mxu0 %v1425_v18 }
 0x9c6   : > { %v1309_v39 = vadd.f32 %v1308_v37, %v3371_v7  ;;  %v1346_v7 = vpack.c.bf16 %v1343_v48, %v1342_v47  ;;  %2895 = vmatprep.subr.bf16.mxu0 %v3187_v3 }
 0x9c7   : > { %v2874_v40 = vpop.f32.mrf.mxu0 }
 0x9c8   : > { %v1312_v41 = vsel %vm603_vm1, %v1309_v39, 0.0  ;;  %2876 = vmatpush3.bf16.msra.mxu1 %v1346_v7 }
 0x9c9   : > { %1313 = vadd.xlane.f32.xlu1 %v1312_v41  ;;  %2877 = vmatprep.subr.bf16.mxu1 %v3187_v3 }
 0x9ca   : > { %2896 = vmatpush3.bf16.msra.mxu0 %v1424_v20 }
 0x9cb   : > { %2897 = vmatprep.subr.bf16.mxu0 %v3187_v3 }
 0x9cc   : > { %2878 = vmatpush3.bf16.msra.mxu1 %v1345_v51 }
 0x9cd   : > { %2903 = vmatprep.subr.bf16.mxu1 %v3187_v3 }
 0x9ce   : > { %2898 = vmatpush3.bf16.msra.mxu0 %v1423_v24 }
 0x9cf   : > { %2929 = vmatprep.subr.bf16.mxu0 %v3187_v3 }
 0xa52   : > { %v1314_v42 = vpop.xlane.xlu1 %1313 }
 0xa53   : > { %v1316_v43 = vmul.f32 0.03125, %v1314_v42  ;;  %v2645_v42 = vld [vmem:[%s3940_s11] ss:$0 sm:$0xff] }
 0xa55   : > { %v1317_v44 = vsub.f32 %v1309_v39, %v1316_v43 }
 0xa57   : > { %v1318_v45 = vmul.f32 %v1317_v44, %v1317_v44 }
 0xa59   : > { %v1319_v46 = vsel %vm603_vm1, %v1318_v45, 0.0 }
 0xa5a   : > { %1320 = vadd.xlane.f32.xlu1 %v1319_v46 }
 0xae3   : > { %v1321_v52 = vpop.xlane.xlu1 %1320 }
 0xae4   : > { %v1322_v53 = vmul.f32 0.03125, %v1321_v52 }
 0xae6   : > { %v1323_v54 = vadd.f32 1e-12, %v1322_v53 }
 0xae8   : > { %3095 = vrsqrt.f32 %v1323_v54  ;;  %v2650_v54 = vld [vmem:[%s3975_s26 + $0x30] sm:$0xff] }
 0xaf5   : > { %v3096_v55 = vpop.eup %3095 }
 0xaf6   : > { %v1325_v57 = vmul.f32 %v3096_v55, %v1317_v44  ;;  %v2651_v55 = vld [vmem:[%s3975_s26 + $0x38] sm:$0xff] }
 0xaf8   : > { %v1332_v59 = vmul.f32 %v2641_v56, %v1325_v57  ;;  %v1515_v56 = vpack.c.bf16 %v2651_v55, %v2650_v54  ;;  %v2648_v57 = vld [vmem:[%s3975_s26 + $0x20] sm:$0xff] }
 0xafa   : > { %v3527_v60 = vadd.f32 %v2642_v58, %v1332_v59  ;;  %v2649_v58 = vld [vmem:[%s3975_s26 + $0x28] sm:$0xff] }
 0xafb   : > { %v1514_v59 = vpack.c.bf16 %v2649_v58, %v2648_v57  ;;  %v2656_v57 = vld [vmem:[%s3979_s4 + $0x28] sm:$0xff] }
 0xafc   : > { %v1344_v61 = vpack.c.bf16 %v3527_v60, %v3527_v60  ;;  %v1799_v58 = vpack.c.bf16 %v2656_v57, %v2656_v57 }
 0xafe   : > { %2880 = vmatmul.mubr.msk.bf16.vlgmr.msra.gmra.mxu1 %vm603_vm1, %v1344_v61 }
 0xaff   : > { %2907 = vmatprep.mubr.msk.bf16.mxu1 %vm3188_vm0, %v3187_v3  ;;  %2904 = vmatpush3.bf16.msra.mxu1 %v1515_v56 }
 0xb00   : > { %2905 = vmatprep.subr.bf16.mxu1 %v3187_v3 }
 0xb03   : > { %2906 = vmatpush3.bf16.msra.mxu1 %v1514_v59  ;;  %v1804_v59 = vsel %vm727_vm3, %v1799_v58, 0 }
 0xb04   : > { %2911 = vmatprep.subr.bf16.mxu1 %v3187_v3 }
 0xbbe   : > { %v1391_v26 = vpop.f32.mrf.mxu1 }
 0xbbf   : > { %v1392_v28 = vadd.f32 %v2643_v25, %v1391_v26 }
 0xbc0   : > { %v2881_v29 = vpop.f32.mrf.mxu1 }
 0xbc1   : > { %v1397_v30 = vmul.f32 %v1392_v28, %v1392_v28 }
 0xbc2   : > { %v1394_v31 = vpop.f32.mrf.mxu1 }
 0xbc3   : > { %v1398_v32 = vmul.f32 %v1397_v30, %v1392_v28 }
 0xbc4   : > { %v2882_v33 = vpop.f32.mrf.mxu1 }
 0xbc5   : > { %v1399_v34 = vmul.f32 0.044715, %v1398_v32 }
 0xbc7   : > { %v1400_v35 = vadd.f32 %v1399_v34, %v1392_v28 }
 0xbc9   : > { %v1401_v36 = vmul.f32 0.7978846, %v1400_v35 }
 0xbcb   : > { %3097 = vtanh.f32 %v1401_v36 }
 0xbd8   : > { %v3098_v37 = vpop.eup %3097 }
 0xbd9   : > { %v1403_v38 = vadd.f32 1.0, %v3098_v37 }
 0xbdb   : > { %v1404_v39 = vmul.f32 0.5, %v1403_v38 }
 0xbdd   : > { %v1405_v40 = vmul.f32 %v1404_v39, %v1392_v28 }
 0xbdf   : > { %v1422_v41 = vpack.c.bf16 %v1405_v40, %v1405_v40 }
 0xbe1   : > { %2900 = vmatmul.mubr.bf16.vlgmr.msra.gmra.mxu0 %v1422_v41 }
 0xbe2   : > { %2931 = vmatprep.mubr.msk.bf16.mxu0 %vm3188_vm0, %v3187_v3 }
 0xca1   : > { %v1472_v43 = vpop.f32.mrf.mxu0 }
 0xca2   : > { %v1473_v44 = vadd.f32 %v2645_v42, %v1472_v43 }
 0xca3   : > { %v2901_v45 = vpop.f32.mrf.mxu0 }
 0xca4   : > { %v1478_v46 = vadd.f32 %v1473_v44, %v3527_v60 }
 0xca5   : > { %v1475_v47 = vpop.f32.mrf.mxu0 }
 0xca6   : > { %v1481_v48 = vsel %vm603_vm1, %v1478_v46, 0.0 }
 0xca7   : > { %1482 = vadd.xlane.f32.xlu1 %v1481_v48  ;;  %v2902_v7 = vpop.f32.mrf.mxu0 }
 0xd30   : > { %v1483_v49 = vpop.xlane.xlu1 %1482 }
 0xd31   : > { %v1484_v50 = vmul.f32 0.03125, %v1483_v49 }
 0xd33   : > { %v1485_v51 = vsub.f32 %v1478_v46, %v1484_v50 }
 0xd35   : > { %v1486_v52 = vmul.f32 %v1485_v51, %v1485_v51 }
 0xd37   : > { %v1487_v53 = vsel %vm603_vm1, %v1486_v52, 0.0 }
 0xd38   : > { %1488 = vadd.xlane.f32.xlu1 %v1487_v53 }
 0xdc1   : > { %v1489_v60 = vpop.xlane.xlu1 %1488 }
 0xdc2   : > { %v1490_v61 = vmul.f32 0.03125, %v1489_v60 }
 0xdc4   : > { %v1491_v62 = vadd.f32 1e-12, %v1490_v61  ;;  %v2655_v61 = vld [vmem:[%s3979_s4 + $0x20] sm:$0xff] }
 0xdc6   : > { %3099 = vrsqrt.f32 %v1491_v62  ;;  %v1685_v62 = vpack.c.bf16 %v2655_v61, %v2655_v61 }
 0xdd3   : > { %v3100_v63 = vpop.eup %3099 }
 0xdd4   : > { %v1493_v1 = vmul.f32 %v3100_v63, %v1485_v51 }
 0xdd6   : > { %v1500_v4 = vmul.f32 %v2646_v0, %v1493_v1 }
 0xdd8   : > { %v3621_v5 = vadd.f32 %v2647_v2, %v1500_v4  ;;  %v1850_v2 = vsel %vm727_vm3, %v1685_v62, 0 }
 0xdda   : > { %v1513_v6 = vpack.c.bf16 %v3621_v5, %v3621_v5 }
 0xddc   : > { %2908 = vmatmul.mubr.msk.bf16.vlgmr.msra.gmra.mxu1 %vm603_vm1, %v1513_v6 }
 0xddd   : > { %2913 = vmatprep.mubr.msk.bf16.mxu1 %vm3188_vm0, %v3187_v3 }
 0xe9c   : > { %v1561_v9 = vpop.f32.mrf.mxu1 }
 0xe9d   : > { %v1562_v10 = vadd.f32 %v2653_v8, %v1561_v9 }
 0xe9e   : > { %v2909_v11 = vpop.f32.mrf.mxu1 }
 0xe9f   : > { %v3631_v12 = vpack.c.bf16 %v1562_v10, %v1562_v10 }
 0xea0   : > { %v1564_v14 = vpop.f32.mrf.mxu1 }
 0xea1   : > { %1574 = vrot.lane.b32.xlu1 %v3631_v12, %s3980_s22 }
 0xea2   : > { %v2910_v15 = vpop.f32.mrf.mxu1 }
 0xf13   : > { %v1575_v16 = vpop.permute.xlu1 %1574 }
 0xf14   : > { %v1580_v17 = vsel %vm655_vm2, %v1575_v16, 0 }
 0xf15   : > { %2912 = vmatpush3.bf16.xpose.msra.mxu1 %v1580_v17 }
 0xf16   : > { %2917 = vmatprep.subr.bf16.mxu1 %v3187_v3 }
 0xf1c   : > { %2914 = vmatmul.mubr.msk.bf16.vlgmr.msra.gmra.mxu1 %vm655_vm2, %v3631_v12 }
 0xf1d   : > { %2919 = vmatprep.mubr.msk.bf16.mxu1 %vm3188_vm0, %v3187_v3 }
 0xfdc   : > { %v1616_v18 = vpop.f32.mrf.mxu1 }
 0xfdd   : > { %v1622_v13 = vmul.f32 0.35355338, %v1616_v18 }
 0xfde   : > { %v2915_v19 = vpop.f32.mrf.mxu1 }
 0xfdf   : > { %v1623_v20 = vadd.f32 %v1622_v13, %v3406_v27 }
 0xfe0   : > { %v1619_v22 = vpop.f32.mrf.mxu1 }
 0xfe1   : > { %v1624_v23 = vsel %vm655_vm2, %v1623_v20, -inf }
 0xfe2   : > { %1625 = vmax.xlane.f32.xlu0 %v1624_v23  ;;  %v2916_v24 = vpop.f32.mrf.mxu1 }
 0xff8   : > { %1636 = vrot.lane.b32.xlu0 %v3631_v12, %s3981_s23 }
 0xffc   : > { %1686 = vrot.lane.b32.xlu0 %v3631_v12, %s3982_s25  ;;  %s3987_s25 = smov 48  }
0x106b   : > { %v1626_v25 = vpop.xlane.xlu0 %1625 }
0x106c   : > { %v1627_v26 = vsub.f32 %v1623_v20, %v1626_v25 }
0x106e   : > { %v1628_v28 = vmul.f32 1.442695, %v1627_v26 }
0x106f   : > { %v1637_v29 = vpop.permute.xlu0 %1636 }
0x1070   : > { %3101 = vpow2.f32 %v1628_v28  ;;  %v1642_v30 = vsel %vm727_vm3, %v1637_v29, 0 }
0x1071   : > { %2918 = vmatpush3.bf16.msra.mxu1 %v1642_v30 }
0x1072   : > { %2923 = vmatprep.subr.bf16.mxu1 %v3187_v3 }
0x1073   : > { %v1687_v39 = vpop.permute.xlu0 %1686 }
0x107d   : > { %v3102_v31 = vpop.eup %3101 }
0x107e   : > { %v1630_v32 = vsel %vm655_vm2, %v3102_v31, 0.0 }
0x107f   : > { %1631 = vadd.xlane.f32.xlu1 %v1630_v32 }
0x1090   : > { %1688 = vrot.lane.b32.xlu1 %v3631_v12, %s3983_s29  ;;  %s3988_s29 = smov 104  }
0x1108   : > { %v1632_v33 = vpop.xlane.xlu1 %1631 }
0x1109   : > { %3103 = vrcp.f32 %v1632_v33 }
0x110c   : > { %v1689_v36 = vpop.permute.xlu1 %1688 }
0x110d   : > { %v1694_v38 = vsel %vm655_vm2, %v1689_v36, 0 }
0x1116   : > { %v3104_v34 = vpop.eup %3103 }
0x1117   : > { %v1634_v35 = vmul.f32 %v3104_v34, %v3102_v31 }
0x1119   : > { %v1635_v37 = vpack.c.bf16 %v1634_v35, %v1634_v35 }
0x111b   : > { %2920 = vmatmul.mubr.msk.bf16.vlgmr.msra.gmra.mxu1 %vm655_vm2, %v1635_v37 }
0x111c   : > { %2924 = vmatpush3.bf16.xpose.msra.mxu1 %v1694_v38  ;;  %2925 = vmatprep.mubr.msk.bf16.mxu1 %vm3188_vm0, %v3187_v3 }
0x111d   : > { %2935 = vmatprep.subr.bf16.mxu1 %v3187_v3 }
0x1123   : > { %2926 = vmatmul.mubr.msk.bf16.vlgmr.msra.gmra.mxu1 %vm655_vm2, %v1687_v39 }
0x1124   : > { %2937 = vmatprep.mubr.msk.bf16.mxu1 %vm3188_vm0, %v3187_v3  ;;  %2936 = vmatpush3.bf16.msra.mxu1 %v1804_v59 }
0x1125   : > { %2947 = vmatprep.subr.bf16.mxu1 %v3187_v3 }
0x11db   : > { %v1678_v40 = vpop.f32.mrf.mxu1 }
0x11dc   : > { %v1684_v4 = vpack.c.bf16 %v1678_v40, %v1678_v40 }
0x11dd   : > { %v2921_v41 = vpop.f32.mrf.mxu1 }
0x11df   : > { %v1681_v42 = vpop.f32.mrf.mxu1 }
0x11e1   : > { %v2922_v43 = vpop.f32.mrf.mxu1 }
0x11e3   : > { %v1730_v44 = vpop.f32.mrf.mxu1 }
0x11e4   : > { %v1736_v45 = vmul.f32 0.35355338, %v1730_v44 }
0x11e5   : > { %v2927_v46 = vpop.f32.mrf.mxu1 }
0x11e6   : > { %v1737_v47 = vadd.f32 %v1736_v45, %v3406_v27 }
0x11e7   : > { %v1733_v48 = vpop.f32.mrf.mxu1 }
0x11e8   : > { %v1738_v7 = vsel %vm655_vm2, %v1737_v47, -inf }
0x11e9   : > { %1739 = vmax.xlane.f32.xlu0 %v1738_v7  ;;  %v2928_v49 = vpop.f32.mrf.mxu1 }
0x11ff   : > { %1750 = vrot.lane.b32.xlu0 %v3631_v12, %s3984_s24  ;;  %s3989_s24 = smov 72  }
0x1203   : > { %1892 = vrot.lane.b32.xlu0 %v3631_v12, %s3985_s1 }
0x1272   : > { %v1740_v50 = vpop.xlane.xlu0 %1739 }
0x1273   : > { %v1741_v51 = vsub.f32 %v1737_v47, %v1740_v50  ;;  %v2657_v47 = vld [vmem:[%s3979_s4 + $0x30] sm:$0xff] }
0x1274   : > { %v2005_v48 = vpack.c.bf16 %v2657_v47, %v2657_v47 }
0x1275   : > { %v1742_v52 = vmul.f32 1.442695, %v1741_v51 }
0x1276   : > { %v1751_v53 = vpop.permute.xlu0 %1750  ;;  %v2010_v7 = vsel %vm727_vm3, %v2005_v48, 0 }
0x1277   : > { %3105 = vpow2.f32 %v1742_v52  ;;  %v1756_v54 = vsel %vm727_vm3, %v1751_v53, 0 }
0x1278   : > { %2930 = vmatpush3.bf16.msra.mxu0 %v1756_v54 }
0x1279   : > { %2941 = vmatprep.subr.bf16.mxu0 %v3187_v3 }
0x127a   : > { %v1893_v17 = vpop.permute.xlu0 %1892 }
0x1284   : > { %v3106_v55 = vpop.eup %3105 }
0x1285   : > { %v1744_v56 = vsel %vm655_vm2, %v3106_v55, 0.0 }
0x1286   : > { %1745 = vadd.xlane.f32.xlu1 %v1744_v56 }
0x1297   : > { %1894 = vrot.lane.b32.xlu1 %v3631_v12, %s3986_s21 }
0x130f   : > { %v1746_v60 = vpop.xlane.xlu1 %1745 }
0x1310   : > { %3107 = vrcp.f32 %v1746_v60 }
0x1313   : > { %v1895_v6 = vpop.permute.xlu1 %1894 }
0x1314   : > { %v1900_v11 = vsel %vm655_vm2, %v1895_v6, 0 }
0x131d   : > { %v3108_v63 = vpop.eup %3107 }
0x131e   : > { %v1748_v0 = vmul.f32 %v3108_v63, %v3106_v55 }
0x1320   : > { %v1749_v1 = vpack.c.bf16 %v1748_v0, %v1748_v0 }
0x1322   : > { %2932 = vmatmul.mubr.msk.bf16.vlgmr.msra.gmra.mxu0 %vm655_vm2, %v1749_v1 }
0x1323   : > { %2942 = vmatpush3.bf16.msra.mxu0 %v1850_v2  ;;  %2943 = vmatprep.mubr.msk.bf16.mxu0 %vm3188_vm0, %v3187_v3 }
0x1324   : > { %2953 = vmatprep.subr.bf16.mxu0 %v3187_v3 }
0x132a   : > { %2944 = vmatmul.mubr.msk.bf16.vlgmr.msra.gmra.mxu0 %vm655_vm2, %v1684_v4 }
0x132b   : > { %2955 = vmatprep.mubr.msk.bf16.mxu0 %vm3188_vm0, %v3187_v3 }
0x13e2   : > { %v1792_v8 = vpop.f32.mrf.mxu0 }
0x13e3   : > { %v1798_v9 = vpack.c.bf16 %v1792_v8, %v1792_v8 }
0x13e4   : > { %v2933_v10 = vpop.f32.mrf.mxu0 }
0x13e5   : > { %2938 = vmatmul.mubr.msk.bf16.vlgmr.msra.gmra.mxu1 %vm655_vm2, %v1798_v9  ;;  %v2658_v10 = vld [vmem:[%s3979_s4 + $0x38] sm:$0xff] }
0x13e6   : > { %2948 = vmatpush3.bf16.xpose.msra.mxu1 %v1900_v11  ;;  %v1795_v14 = vpop.f32.mrf.mxu0  ;;  %2949 = vmatprep.mubr.msk.bf16.mxu1 %vm3188_vm0, %v3187_v3  ;;  %v2166_v11 = vpack.c.bf16 %v2658_v10, %v2658_v10  ;;  %v2687_v10 = vld [vmem:[%s3939_s10 + $0x98] sm:$0xff] }
0x13e7   : > { %2959 = vmatprep.subr.bf16.mxu1 %v3187_v3 }
0x13e8   : > { %v2934_v15 = vpop.f32.mrf.mxu0 }
0x13e9   : > { %v2171_v15 = vsel %vm727_vm3, %v2166_v11, 0 }
0x13ea   : > { %v3692_v16 = vpop.f32.mrf.mxu0 }
0x13ec   : > { %v2945_v18 = vpop.f32.mrf.mxu0 }
0x13ed   : > { %2950 = vmatmul.mubr.msk.bf16.vlgmr.msra.gmra.mxu1 %vm655_vm2, %v1893_v17 }
0x13ee   : > { %v1889_v13 = vpop.f32.mrf.mxu0  ;;  %2961 = vmatprep.mubr.msk.bf16.mxu1 %vm3188_vm0, %v3187_v3  ;;  %2960 = vmatpush3.bf16.msra.mxu1 %v2010_v7  ;;  %v2675_v7 = vld [vmem:[%s3935_s6 + $0x1] ss:$0 sm:$0xff] }
0x13ef   : > { %2971 = vmatprep.subr.bf16.mxu1 %v3187_v3 }
0x13f0   : > { %v2946_v19 = vpop.f32.mrf.mxu0 }
0x14a5   : > { %v3697_v20 = vpop.f32.mrf.mxu1 }
0x14a6   : > { %v1887_v4 = vadd.f32 %v3692_v16, %v3697_v20 }
0x14a7   : > { %v2939_v22 = vpop.f32.mrf.mxu1 }
0x14a9   : > { %v1843_v23 = vpop.f32.mrf.mxu1 }
0x14ab   : > { %v2940_v24 = vpop.f32.mrf.mxu1 }
0x14ad   : > { %v1936_v25 = vpop.f32.mrf.mxu1 }
0x14ae   : > { %v1942_v26 = vmul.f32 0.35355338, %v1936_v25 }
0x14af   : > { %v2951_v28 = vpop.f32.mrf.mxu1 }
0x14b0   : > { %v1943_v29 = vadd.f32 %v1942_v26, %v3406_v27  ;;  %v2672_v26 = vld [vmem:[%s3934_s5 + $0x1] ss:$0 sm:$0xff] }
0x14b1   : > { %v1939_v30 = vpop.f32.mrf.mxu1 }
0x14b2   : > { %v1944_v31 = vsel %vm655_vm2, %v1943_v29, -inf }
0x14b3   : > { %1945 = vmax.xlane.f32.xlu0 %v1944_v31  ;;  %v2952_v32 = vpop.f32.mrf.mxu1 }
0x14c9   : > { %1956 = vrot.lane.b32.xlu0 %v3631_v12, %s3987_s25 }
0x14cd   : > { %2053 = vrot.lane.b32.xlu0 %v3631_v12, %s3988_s29  ;;  %s575_s29 = sand.u32 1, %s3177_s28  }
0x14ce   : > { %s576_s1 = scalar_lea.vmem [#allocation2], %s575_s29  ;;  %s2545_s23 = scalar_lea.sflag [#allocation3], %s575_s29 }
0x14cf   : > { %s2557_s21 = sshll.u32 %s576_s1, 4  ;;  %s2558_s21 = int_to_ptr.vmem [resolvable:$true] %s2557_s21 }
0x14d0   : > { %s3125_s25 = scalar_lea.vmem %s2558_s21, 16 }
0x14d1   : > { %p3126_p11 = scmp.ne.s32.totalorder %s2558_s21, %s3125_s25 }
0x14d3   : > { %p3127_p12 = pnand %p3126_p11, %p3334_p5 }
0x14d5   : > { %p3128_p13 = pneg %p3127_p12 }
0x153c   : > { %v1946_v33 = vpop.xlane.xlu0 %1945 }
0x153d   : > { %v1947_v34 = vsub.f32 %v1943_v29, %v1946_v33 }
0x153f   : > { %v1948_v35 = vmul.f32 1.442695, %v1947_v34 }
0x1540   : > { %v1957_v36 = vpop.permute.xlu0 %1956 }
0x1541   : > { %3109 = vpow2.f32 %v1948_v35  ;;  %v1962_v37 = vsel %vm727_vm3, %v1957_v36, 0 }
0x1542   : > { %2954 = vmatpush3.bf16.msra.mxu0 %v1962_v37 }
0x1543   : > { %2965 = vmatprep.subr.bf16.mxu0 %v3187_v3 }
0x1544   : > { %v2054_v46 = vpop.permute.xlu0 %2053 }
0x154e   : > { %v3110_v38 = vpop.eup %3109 }
0x154f   : > { %v1950_v39 = vsel %vm655_vm2, %v3110_v38, 0.0 }
0x1550   : > { %1951 = vadd.xlane.f32.xlu1 %v1950_v39 }
0x1561   : > { %2055 = vrot.lane.b32.xlu1 %v3631_v12, %s3989_s24  ;;  %s2708_s24 = sshll.u32 %s3317_s0, 4  ;;  %s3129_s0 = sshll.u32 %s3200_s3, 4  ;;  %s3130_s0 = int_to_ptr.vmem [resolvable:$false] %s3129_s0 }
0x1562   : > { %s3893_s22 = scalar_lea.hbm %s3947_s18, %s2708_s24  ;;  %s3131_s4 = scalar_lea.vmem %s3130_s0, 32 }
0x1563   : > { %p3132_p0 = scmp.lt.s32.totalorder %s2558_s21, %s3130_s0  ;;  %p3133_p1 = scmp.lt.s32.totalorder %s3131_s4, %s3125_s25 }
0x1565   : > { %p3134_p2 = por %p3133_p1, %p3132_p0 }
0x1567   : > { %p3135_p3 = pnand %p3134_p2, %p3128_p13 }
0x15d9   : > { %v1952_v40 = vpop.xlane.xlu1 %1951 }
0x15da   : > { %3111 = vrcp.f32 %v1952_v40  ;;  %v2679_v40 = vld [vmem:[%s3937_s8 + $0x30] sm:$0xff] }
0x15dd   : > { %v2056_v43 = vpop.permute.xlu1 %2055 }
0x15de   : > { %v2061_v45 = vsel %vm655_vm2, %v2056_v43, 0  ;;  %v2678_v43 = vld [vmem:[%s3937_s8 + $0x28] sm:$0xff] }
0x15e7   : > { %v3112_v41 = vpop.eup %3111 }
0x15e8   : > { %v1954_v42 = vmul.f32 %v3112_v41, %v3110_v38  ;;  %v2680_v41 = vld [vmem:[%s3937_s8 + $0x38] sm:$0xff] }
0x15ea   : > { %v1955_v44 = vpack.c.bf16 %v1954_v42, %v1954_v42  ;;  %v2677_v42 = vld [vmem:[%s3937_s8 + $0x20] sm:$0xff] }
0x15ec   : > { %2956 = vmatmul.mubr.msk.bf16.vlgmr.msra.gmra.mxu0 %vm655_vm2, %v1955_v44  ;;  %v2261_v44 = vpack.c.bf16 %v2678_v43, %v2677_v42 }
0x15ed   : > { %2966 = vmatpush3.bf16.xpose.msra.mxu0 %v2061_v45  ;;  %2967 = vmatprep.mubr.msk.bf16.mxu0 %vm3188_vm0, %v3187_v3 }
0x15ee   : > { %2977 = vmatprep.subr.bf16.mxu0 %v3187_v3 }
0x15f4   : > { %2968 = vmatmul.mubr.msk.bf16.vlgmr.msra.gmra.mxu0 %vm655_vm2, %v2054_v46 }
0x15f5   : > { %2979 = vmatprep.mubr.msk.bf16.mxu0 %vm3188_vm0, %v3187_v3  ;;  %2978 = vmatpush3.bf16.msra.mxu0 %v2171_v15  ;;  %v2685_v15 = vld [vmem:[%s3939_s10 + $0x88] sm:$0xff] }
0x15f6   : > { %2991 = vmatprep.subr.bf16.mxu0 %v3187_v3 }
0x16ac   : > { %v1998_v49 = vpop.f32.mrf.mxu0 }
0x16ad   : > { %v2004_v50 = vpack.c.bf16 %v1998_v49, %v1998_v49 }
0x16ae   : > { %v2957_v51 = vpop.f32.mrf.mxu0 }
0x16af   : > { %2962 = vmatmul.mubr.msk.bf16.vlgmr.msra.gmra.mxu1 %vm655_vm2, %v2004_v50  ;;  %v2676_v50 = vld [vmem:[%s3936_s7 + $0x1] ss:$0 sm:$0xff] }
0x16b0   : > { %v2001_v52 = vpop.f32.mrf.mxu0  ;;  %2973 = vmatprep.mubr.msk.bf16.mxu1 %vm3188_vm0, %v3187_v3 }
0x16b2   : > { %v2958_v53 = vpop.f32.mrf.mxu0 }
0x16b4   : > { %v2097_v54 = vpop.f32.mrf.mxu0 }
0x16b5   : > { %v2103_v55 = vmul.f32 0.35355338, %v2097_v54  ;;  %v2698_v54 = vld [vmem:[%s3939_s10 + $0xf0] sm:$0xff] }
0x16b6   : > { %v2969_v56 = vpop.f32.mrf.mxu0 }
0x16b7   : > { %v2104_v57 = vadd.f32 %v2103_v55, %v3406_v27  ;;  %v2699_v55 = vld [vmem:[%s3939_s10 + $0xf8] sm:$0xff] }
0x16b8   : > { %v2100_v58 = vpop.f32.mrf.mxu0  ;;  %v2348_v56 = vpack.c.bf16 %v2699_v55, %v2698_v54  ;;  %v2704_v55 = vld [vmem:[%s3941_s12 + $0x1] ss:$0 sm:$0xff] }
0x16b9   : > { %v2105_v59 = vsel %vm655_vm2, %v2104_v57, -inf  ;;  %v2697_v58 = vld [vmem:[%s3939_s10 + $0xe8] sm:$0xff] }
0x16ba   : > { %2106 = vmax.xlane.f32.xlu0 %v2105_v59  ;;  %v2970_v60 = vpop.f32.mrf.mxu0 }
0x16bb   : > { %v2694_v60 = vld [vmem:[%s3939_s10 + $0xd0] sm:$0xff] }
0x16d0   : > { %2117 = vrot.lane.b32.xlu0 %v3631_v12, %s3990_s19 }
0x1743   : > { %v2107_v61 = vpop.xlane.xlu0 %2106 }
0x1744   : > { %v2108_v62 = vsub.f32 %v2104_v57, %v2107_v61  ;;  %v2696_v57 = vld [vmem:[%s3939_s10 + $0xe0] sm:$0xff]  ;;  %v2695_v61 = vld [vmem:[%s3939_s10 + $0xd8] sm:$0xff] }
0x1745   : > { %v2347_v59 = vpack.c.bf16 %v2697_v58, %v2696_v57  ;;  %v2705_v57 = vld [vmem:[%s3942_s13 + $0x1] ss:$0 sm:$0xff] }
0x1746   : > { %v2109_v63 = vmul.f32 1.442695, %v2108_v62  ;;  %v2346_v62 = vpack.c.bf16 %v2695_v61, %v2694_v60  ;;  %v2483_v61 = vld [vmem:[%s3945_s16 + $0x10] sm:$0xff] }
0x1747   : > { %v2118_v0 = vpop.permute.xlu0 %2117 }
0x1748   : > { %3113 = vpow2.f32 %v2109_v63  ;;  %v2123_v1 = vsel %vm727_vm3, %v2118_v0, 0  ;;  %v2692_v63 = vld [vmem:[%s3939_s10 + $0xc0] sm:$0xff]  ;;  %v2693_v0 = vld [vmem:[%s3939_s10 + $0xc8] sm:$0xff] }
0x1749   : > { %2972 = vmatpush3.bf16.msra.mxu1 %v2123_v1  ;;  %v2345_v1 = vpack.c.bf16 %v2693_v0, %v2692_v63  ;;  %v2481_v0 = vld [vmem:[%s3945_s16] sm:$0xff] }
0x174a   : > { %2983 = vmatprep.subr.bf16.mxu1 %v3187_v3 }
0x1755   : > { %v3114_v2 = vpop.eup %3113 }
0x1756   : > { %v2111_v27 = vsel %vm655_vm2, %v3114_v2, 0.0 }
0x1757   : > { %2112 = vadd.xlane.f32.xlu1 %v2111_v27  ;;  %v2691_v27 = vld [vmem:[%s3939_s10 + $0xb8] sm:$0xff] }
0x176f   : > { %v2046_v6 = vpop.f32.mrf.mxu1 }
0x1770   : > { %v2052_v8 = vadd.f32 %v2046_v6, %v1887_v4  ;;  %v2688_v6 = vld [vmem:[%s3939_s10 + $0xa0] sm:$0xff] }
0x1771   : > { %v2963_v12 = vpop.f32.mrf.mxu1 }
0x1773   : > { %v2049_v9 = vpop.f32.mrf.mxu1 }
0x1774   : > { %v2686_v9 = vld [vmem:[%s3939_s10 + $0x90] sm:$0xff] }
0x1775   : > { %v2964_v14 = vpop.f32.mrf.mxu1  ;;  %v2342_v11 = vpack.c.bf16 %v2687_v10, %v2686_v9 }
0x1776   : > { %v2684_v14 = vld [vmem:[%s3939_s10 + $0x80] sm:$0xff] }
0x17e0   : > { %v2113_v17 = vpop.xlane.xlu1 %2112 }
0x17e1   : > { %3115 = vrcp.f32 %v2113_v17  ;;  %v2341_v17 = vpack.c.bf16 %v2685_v15, %v2684_v14  ;;  %v2488_v14 = vld [vmem:[%s3946_s17] sm:$0x1] }
0x17ee   : > { %v3116_v18 = vpop.eup %3115 }
0x17ef   : > { %v2115_v13 = vmul.f32 %v3116_v18, %v3114_v2  ;;  %v2690_v2 = vld [vmem:[%s3939_s10 + $0xb0] sm:$0xff]  ;;  %v2682_v18 = vld [vmem:[%s3938_s9 + $0x1] ss:$0 sm:$0xff] }
0x17f0   : > { %v2344_v4 = vpack.c.bf16 %v2691_v27, %v2690_v2  ;;  %v2436_v27 = vld [vmem:[%s3944_s15] sm:$0x1] }
0x17f1   : > { %v2116_v16 = vpack.c.bf16 %v2115_v13, %v2115_v13 }
0x17f3   : > { %2974 = vmatmul.mubr.msk.bf16.vlgmr.msra.gmra.mxu1 %vm655_vm2, %v2116_v16 }
0x17f4   : > { %2987 = vmatprep.mubr.msk.bf16.mxu1 %vm3188_vm0, %v3187_v3 }
0x18b3   : > { %v2159_v19 = vpop.f32.mrf.mxu1 }
0x18b4   : > { %v2165_v20 = vpack.c.bf16 %v2159_v19, %v2159_v19 }
0x18b5   : > { %v2975_v22 = vpop.f32.mrf.mxu1 }
0x18b6   : > { %2980 = vmatmul.mubr.msk.bf16.vlgmr.msra.gmra.mxu0 %vm655_vm2, %v2165_v20 }
0x18b7   : > { %v2162_v23 = vpop.f32.mrf.mxu1  ;;  %3007 = vmatprep.mubr.msk.bf16.mxu0 %vm3188_vm0, %v3187_v3  ;;  %2992 = vmatpush3.bf16.msra.mxu0 %v2348_v56 }
0x18b8   : > { %2993 = vmatprep.subr.bf16.mxu0 %v3187_v3 }
0x18b9   : > { %v2976_v24 = vpop.f32.mrf.mxu1 }
0x18bb   : > { %2994 = vmatpush3.bf16.msra.mxu0 %v2347_v59 }
0x18bc   : > { %2995 = vmatprep.subr.bf16.mxu0 %v3187_v3 }
0x18bf   : > { %2996 = vmatpush3.bf16.msra.mxu0 %v2346_v62  ;;  %v2484_v62 = vld [vmem:[%s3945_s16 + $0x18] sm:$0xff] }
0x18c0   : > { %2997 = vmatprep.subr.bf16.mxu0 %v3187_v3  ;;  %v2487_v63 = vpack.c.bf16 %v2484_v62, %v2483_v61 }
0x18c3   : > { %2998 = vmatpush3.bf16.msra.mxu0 %v2345_v1  ;;  %v2482_v1 = vld [vmem:[%s3945_s16 + $0x8] sm:$0xff] }
0x18c4   : > { %2999 = vmatprep.subr.bf16.mxu0 %v3187_v3  ;;  %v2486_v2 = vpack.c.bf16 %v2482_v1, %v2481_v0 }
0x18c7   : > { %3000 = vmatpush3.bf16.msra.mxu0 %v2344_v4 }
0x18c8   : > { %3001 = vmatprep.subr.bf16.mxu0 %v3187_v3 }
0x1976   : > { %v2207_v25 = vpop.f32.mrf.mxu0 }
0x1977   : > { %v2213_v28 = vadd.f32 %v2207_v25, %v2052_v8  ;;  %v2689_v8 = vld [vmem:[%s3939_s10 + $0xa8] sm:$0xff] }
0x1978   : > { %v2981_v29 = vpop.f32.mrf.mxu0  ;;  %v2343_v12 = vpack.c.bf16 %v2689_v8, %v2688_v6 }
0x1979   : > { %v2222_v30 = vadd.f32 %v2672_v26, %v2213_v28 }
0x197a   : > { %v2210_v31 = vpop.f32.mrf.mxu0  ;;  %3002 = vmatpush3.bf16.msra.mxu0 %v2343_v12 }
0x197b   : > { %v2223_v32 = vadd.f32 %v2222_v30, %v3621_v5  ;;  %v2262_v5 = vpack.c.bf16 %v2680_v41, %v2679_v40  ;;  %3003 = vmatprep.subr.bf16.mxu0 %v3187_v3 }
0x197c   : > { %v2982_v33 = vpop.f32.mrf.mxu0 }
0x197d   : > { %v2228_v34 = vsel %vm603_vm1, %v2223_v32, 0.0  ;;  %2984 = vmatpush3.bf16.msra.mxu1 %v2262_v5 }
0x197e   : > { %2229 = vadd.xlane.f32.xlu1 %v2228_v34  ;;  %2985 = vmatprep.subr.bf16.mxu1 %v3187_v3  ;;  %v2701_v34 = vld [vmem:[%s3940_s11 + $0x1] ss:$0 sm:$0xff] }
0x197f   : > { %3004 = vmatpush3.bf16.msra.mxu0 %v2342_v11  ;;  %v2533_v11 = vand.u32 127, %v704_v21 }
0x1980   : > { %3005 = vmatprep.subr.bf16.mxu0 %v3187_v3 }
0x1981   : > { %2986 = vmatpush3.bf16.msra.mxu1 %v2261_v44  ;;  %vm2534_vm4 = vcmp.lt.s32.totalorder %v2533_v11, 3 }
0x1982   : > { %3011 = vmatprep.subr.bf16.mxu1 %v3187_v3 }
0x1983   : > { %3006 = vmatpush3.bf16.msra.mxu0 %v2341_v17 }
0x1a07   : > { %v2230_v35 = vpop.xlane.xlu1 %2229 }
0x1a08   : > { %v2231_v36 = vmul.f32 0.03125, %v2230_v35 }
0x1a0a   : > { %v2232_v37 = vsub.f32 %v2223_v32, %v2231_v36 }
0x1a0c   : > { %v2233_v38 = vmul.f32 %v2232_v37, %v2232_v37 }
0x1a0e   : > { %v2234_v39 = vsel %vm603_vm1, %v2233_v38, 0.0 }
0x1a0f   : > { %2235 = vadd.xlane.f32.xlu1 %v2234_v39 }
0x1a98   : > { %v2236_v45 = vpop.xlane.xlu1 %2235 }
0x1a99   : > { %v2237_v46 = vmul.f32 0.03125, %v2236_v45 }
0x1a9b   : > { %v2238_v47 = vadd.f32 1e-12, %v2237_v46  ;;  %v2431_v46 = vld [vmem:[%s3943_s14 + $0x10] sm:$0xff] }
0x1a9d   : > { %3117 = vrsqrt.f32 %v2238_v47  ;;  %v2432_v47 = vld [vmem:[%s3943_s14 + $0x18] sm:$0xff] }
0x1aaa   : > { %v3118_v48 = vpop.eup %3117 }
0x1aab   : > { %v2240_v49 = vmul.f32 %v3118_v48, %v2232_v37  ;;  %v2435_v48 = vpack.c.bf16 %v2432_v47, %v2431_v46 }
0x1aad   : > { %v2247_v51 = vmul.f32 %v2675_v7, %v2240_v49  ;;  %v2429_v7 = vld [vmem:[%s3943_s14] sm:$0xff]  ;;  %v2430_v49 = vld [vmem:[%s3943_s14 + $0x8] sm:$0xff] }
0x1aaf   : > { %v3772_v52 = vadd.f32 %v2676_v50, %v2247_v51  ;;  %v2434_v50 = vpack.c.bf16 %v2430_v49, %v2429_v7 }
0x1ab1   : > { %v2260_v53 = vpack.c.bf16 %v3772_v52, %v3772_v52 }
0x1ab3   : > { %2988 = vmatmul.mubr.msk.bf16.vlgmr.msra.gmra.mxu1 %vm603_vm1, %v2260_v53 }
0x1ab4   : > { %3015 = vmatprep.mubr.msk.bf16.mxu1 %vm3188_vm0, %v3187_v3  ;;  %3012 = vmatpush3.bf16.msra.mxu1 %v2435_v48 }
0x1ab5   : > { %3013 = vmatprep.subr.bf16.mxu1 %v3187_v3 }
0x1ab8   : > { %3014 = vmatpush3.bf16.msra.mxu1 %v2434_v50 }
0x1ab9   : > { %3019 = vmatprep.subr.bf16.mxu1 %v3187_v3 }
0x1b73   : > { %v2308_v13 = vpop.f32.mrf.mxu1 }
0x1b74   : > { %v2309_v16 = vadd.f32 %v2682_v18, %v2308_v13 }
0x1b75   : > { %v2989_v19 = vpop.f32.mrf.mxu1 }
0x1b76   : > { %v2314_v20 = vmul.f32 %v2309_v16, %v2309_v16 }
0x1b77   : > { %v2311_v22 = vpop.f32.mrf.mxu1 }
0x1b78   : > { %v2315_v23 = vmul.f32 %v2314_v20, %v2309_v16 }
0x1b79   : > { %v2990_v24 = vpop.f32.mrf.mxu1 }
0x1b7a   : > { %v2316_v25 = vmul.f32 0.044715, %v2315_v23 }
0x1b7c   : > { %v2317_v26 = vadd.f32 %v2316_v25, %v2309_v16 }
0x1b7e   : > { %v2318_v28 = vmul.f32 0.7978846, %v2317_v26 }
0x1b80   : > { %3119 = vtanh.f32 %v2318_v28 }
0x1b8d   : > { %v3120_v29 = vpop.eup %3119 }
0x1b8e   : > { %v2320_v30 = vadd.f32 1.0, %v3120_v29 }
0x1b90   : > { %v2321_v31 = vmul.f32 0.5, %v2320_v30 }
0x1b92   : > { %v2322_v32 = vmul.f32 %v2321_v31, %v2309_v16 }
0x1b94   : > { %v2340_v33 = vpack.c.bf16 %v2322_v32, %v2322_v32 }
0x1b96   : > { %3008 = vmatmul.mubr.bf16.vlgmr.msra.gmra.mxu0 %v2340_v33 }
0x1c56   : > { %v2391_v35 = vpop.f32.mrf.mxu0 }
0x1c57   : > { %v2392_v36 = vadd.f32 %v2701_v34, %v2391_v35 }
0x1c58   : > { %v3009_v37 = vpop.f32.mrf.mxu0 }
0x1c59   : > { %v2397_v38 = vadd.f32 %v2392_v36, %v3772_v52 }
0x1c5a   : > { %v2394_v39 = vpop.f32.mrf.mxu0 }
0x1c5b   : > { %v2402_v40 = vsel %vm603_vm1, %v2397_v38, 0.0 }
0x1c5c   : > { %2403 = vadd.xlane.f32.xlu1 %v2402_v40  ;;  %v3010_v41 = vpop.f32.mrf.mxu0 }
0x1ce5   : > { %v2404_v5 = vpop.xlane.xlu1 %2403 }
0x1ce6   : > { %v2405_v42 = vmul.f32 0.03125, %v2404_v5 }
0x1ce8   : > { %v2406_v43 = vsub.f32 %v2397_v38, %v2405_v42 }
0x1cea   : > { %v2407_v44 = vmul.f32 %v2406_v43, %v2406_v43 }
0x1cec   : > { %v2408_v45 = vsel %vm603_vm1, %v2407_v44, 0.0 }
0x1ced   : > { %2409 = vadd.xlane.f32.xlu1 %v2408_v45 }
0x1d76   : > { %v2410_v51 = vpop.xlane.xlu1 %2409 }
0x1d77   : > { %v2411_v52 = vmul.f32 0.03125, %v2410_v51 }
0x1d79   : > { %v2412_v53 = vadd.f32 1e-12, %v2411_v52 }
0x1d7b   : > { %3121 = vrsqrt.f32 %v2412_v53 }
0x1d88   : > { %v3122_v54 = vpop.eup %3121 }
0x1d89   : > { %v2414_v56 = vmul.f32 %v3122_v54, %v2406_v43 }
0x1d8b   : > { %v2421_v58 = vmul.f32 %v2704_v55, %v2414_v56 }
0x1d8d   : > { %v2428_v59 = vadd.f32 %v2705_v57, %v2421_v58 }
0x1d8f   : > { %v2433_v60 = vpack.c.bf16 %v2428_v59, %v2428_v59 }
0x1d91   : > { %3016 = vmatmul.mubr.msk.bf16.vlgmr.msra.gmra.mxu1 %vm603_vm1, %v2433_v60 }
0x1d92   : > { %3023 = vmatprep.mubr.msk.bf16.mxu1 %vm3188_vm0, %v3187_v3  ;;  %3020 = vmatpush3.bf16.msra.mxu1 %v2487_v63 }
0x1d93   : > { %3021 = vmatprep.subr.bf16.mxu1 %v3187_v3 }
0x1d96   : > { %3022 = vmatpush3.bf16.msra.mxu1 %v2486_v2 }
0x1e51   : > { %v2474_v4 = vpop.f32.mrf.mxu1 }
0x1e52   : > { %v2475_v6 = vadd.f32 %v2474_v4, %v2436_v27 }
0x1e53   : > { %v3017_v8 = vpop.f32.mrf.mxu1 }
0x1e54   : > { %3123 = vtanh.f32 %v2475_v6 }
0x1e55   : > { %v2477_v12 = vpop.f32.mrf.mxu1 }
0x1e57   : > { %v3018_v3 = vpop.f32.mrf.mxu1 }
0x1e61   : > { %v3124_v9 = vpop.eup %3123 }
0x1e62   : > { %v2485_v10 = vpack.c.bf16 %v3124_v9, %v3124_v9 }
0x1e64   : > { %3024 = vmatmul.mubr.msk.bf16.vlgmr.msra.gmra.mxu1 %vm603_vm1, %v2485_v10 }
0x1f24   : > { %v2526_v15 = vpop.f32.mrf.mxu1 }
0x1f25   : > { %v2527_v17 = vadd.f32 %v2526_v15, %v2488_v14 }
0x1f26   : > { %v3025_v18 = vpop.f32.mrf.mxu1 }
0x1f27   : > { %v2535_v13 = vsel %vm2534_vm4, %v2527_v17, 0.0 }
0x1f28   : > { %v2529_v16 = vpop.f32.mrf.mxu1  ;;  %v2537_v19 = vsel %vm2536_vm5, %v2535_v13, 0.0 }
0x1f29   : > { %2538 = vadd.xlane.f32.xlu0 %v2537_v19 }
0x1f2a   : > { %v3026_v20 = vpop.f32.mrf.mxu1 }
0x1fb2   : > { %v2539_v22 = vpop.xlane.xlu0 %2538 }
0x1fb3   : > { %v2540_v23 = vmul.f32 0.33333334, %v2539_v22 }
0x1fb5   : > { %v2541_v21 = vsub.f32 %v2527_v17, %v2540_v23 }
0x1fb7   : > { %v2542_v24 = vsel %vm2534_vm4, %v2541_v21, 0.0 }
0x1fb8   : > { %2543 = vst [vmem:[%s576_s1] sm:$0x1] %v2542_v24 }
0x1fb9   : > { %3138 = shalt.err (!%p3135_p3)
}
0x1fba   : > { %s3139_s24 = scalar_lea.hbm %s3893_s22, 16  ;;  %s3143_s3 = scalar_lea.hbm %s3947_s18, 32 }
0x1fbb   : > { %p3140_p4 = scmp.ne.s32.totalorder %s3893_s22, %s3139_s24  ;;  %p3144_p9 = scmp.lt.s32.totalorder %s3893_s22, %s3947_s18 }
0x1fbc   : > { %p3145_p10 = scmp.lt.s32.totalorder %s3143_s3, %s3139_s24 }
0x1fbd   : > { %p3141_p7 = pnand %p3140_p4, %p3334_p5 }
0x1fbe   : > { %p3146_p11 = por %p3145_p10, %p3144_p9 }
0x1fbf   : > { %p3142_p8 = pneg %p3141_p7 }
0x1fc1   : > { %p3147_p12 = pnand %p3146_p11, %p3142_p8 }
0x1fc3   : > { %3150 = shalt.err (!%p3147_p12)
}
0x1fc4   : > { %3027 = dma.vmem_to_hbm [thread:$0]  (%p3334_p5), %s2558_s21, 16, %s3893_s22, %s2545_s23  }
0x1fc5 PF: > { %p3033_p13 = scmp.ge.s32.totalorder %s3185_s30, 2  ;;  %s2569_s25 = sand.u32 1, %s3173_s27  }
0x1fc6   : > { %s2570_s0 = scalar_lea.sflag [#allocation3], %s2569_s25 }
0x1fc7   : > { %p3030_p0 = pnand %p3033_p13, %p3338_p6 }
0x1fc9   : > { %p3031_p1 = pneg %p3030_p0 }
0x1fcb   : > { %3168 = dma.done.wait (%p3031_p1), %s2570_s0, 16  }
0x1fcc   : > { %3170 = vsyncadd (%p3031_p1), %s2570_s0, 4294967280  ;;  %s3992_s30 = sld [smem:[#allocation6_spill]]  ;;  %s3995_s27 = smov %s3177_s28 }
0x1fcd   : > { %s3993_s24 = sld [smem:[#allocation5_spill]] }
0x1fce   : > { %s3994_s29 = sld [smem:[#allocation7_spill]] }
0x1fd2   : > { %p28_p2 = scmp.ge.s32.totalorder %s3992_s30, 4  }
0x1fd3   : > { %s3996_s28 = smov %s3993_s24 }
0x1fd4   :  { %30 = sbr.rel (!%p28_p2) target bundleno = 9 (0x9), region = 142 }
0x1fd9   :  { %2574 = vsyncpa [#allocation3], 1 }
0x1fda   :  { %2576 = vsyncpa [#allocation3 + $0x1], 1 }

</bundles_post_ra>
